<compile_context>
chip_gen: v7x
topology: tpu7x:2x2x1
jax: 0.10.0
libtpu: 0.0.40
codegen_flags: <defaults>
</compile_context>

<pallas_src>
import functools

import jax
import jax.numpy as jnp
from jax.experimental import pallas as pl
from jax.experimental.pallas import tpu as pltpu

_MAX_BLOCK_ROWS = 4096   # rows of 32 spatial positions per grid step


def _round_up(x, m):
    return (x + m - 1) // m * m


def _iou_loss_kernel(pred_ref, tgt_ref, w_ref, sum_ref, cnt_ref, *, rows_total):
    # pred_ref : (1, 4, bt, 32) f32  component-major, spatial s = 32*row + j
    # tgt_ref  : (1, bt, 128)   f32  interleaved, lane = 4*j + component
    # w_ref    : (1, bt, 32)    f32
    # sum_ref  : (1, 1, 32)     f32  per-(batch, row-tile) partial sum
    # cnt_ref  : (1, 1, 32)     f32  per-(batch, row-tile) partial count
    bt = w_ref.shape[1]

    p = pred_ref[0]            # (4, bt, 32)
    t = tgt_ref[0]             # (bt, 128)
    w = w_ref[0]               # (bt, 32)

    pred_l, pred_t, pred_r, pred_b = p[0], p[1], p[2], p[3]

    # In-kernel de-interleave of the target via 0/1 selection matmuls.  The
    # MXU is idle in this kernel, and Precision.HIGHEST keeps the value
    # pass-through exact in f32.
    lane = jax.lax.broadcasted_iota(jnp.int32, (128, 32), 0)
    col = jax.lax.broadcasted_iota(jnp.int32, (128, 32), 1)

    def take(c):
        sel = (lane == 4 * col + c).astype(jnp.float32)        # (128, 32)
        return jnp.dot(t, sel,
                       preferred_element_type=jnp.float32,
                       precision=jax.lax.Precision.HIGHEST)    # (bt, 32)

    tgt_l, tgt_t, tgt_r, tgt_b = take(0), take(1), take(2), take(3)

    target_area = (tgt_l + tgt_r) * (tgt_t + tgt_b)
    pred_area = (pred_l + pred_r) * (pred_t + pred_b)
    w_int = jnp.minimum(pred_l, tgt_l) + jnp.minimum(pred_r, tgt_r)
    h_int = jnp.minimum(pred_b, tgt_b) + jnp.minimum(pred_t, tgt_t)
    area_i = w_int * h_int
    area_u = target_area + pred_area - area_i

    # Positive mask; also kill rows past the true row count (the last row-tile
    # may be ragged, so out-of-bounds block rows hold undefined data).
    row_ids = jax.lax.broadcasted_iota(jnp.int32, (bt, 32), 0)
    rows_left = rows_total - pl.program_id(1) * bt
    pos = (w > 0.0) & (row_ids < rows_left)

    # Guard BEFORE the logs so undefined / masked data can never inject
    # NaN/Inf into the masked sum (log(1) == 0 contributes nothing).
    ip1 = jnp.where(pos, area_i + 1.0, 1.0)
    up1 = jnp.where(pos, area_u + 1.0, 1.0)
    losses = jnp.log(up1) - jnp.log(ip1)       # == -log((I+1)/(U+1)), no divide

    mask = pos.astype(jnp.float32)
    sum_ref[...] = jnp.sum(losses * mask, axis=0, keepdims=True)[None]  # (1,1,32)
    cnt_ref[...] = jnp.sum(mask, axis=0, keepdims=True)[None]           # (1,1,32)


def iou_loss(bbox_pred, reg_target, reg_weight):
    """Pallas-backed equivalent of IoULoss.forward."""
    B, C, H, W = bbox_pred.shape
    assert C == 4
    assert reg_target.shape == (B, H, W, 4)
    assert reg_weight.shape == (B, H, W)
    hw = H * W
    f32 = jnp.float32

    # ---- pure view reshapes of the natural layouts -------------------------
    pred = bbox_pred.reshape(B, 4, hw)
    tgt = reg_target.reshape(B, hw * 4)
    wgt = reg_weight.reshape(B, hw)
    if pred.dtype != f32:
        pred = pred.astype(f32)
    if tgt.dtype != f32:
        tgt = tgt.astype(f32)
    if wgt.dtype != f32:
        wgt = wgt.astype(f32)

    # Spatial pad only when HW % 32 != 0 (pads are full HBM copies, keep them
    # to the rare unaligned case; zero weight masks the padded tail out).
    hw_pad = _round_up(hw, 32)
    if hw_pad != hw:
        dp = hw_pad - hw
        pred = jnp.pad(pred, ((0, 0), (0, 0), (0, dp)))
        tgt = jnp.pad(tgt, ((0, 0), (0, 4 * dp)))
        wgt = jnp.pad(wgt, ((0, 0), (0, dp)))
    rows = hw_pad // 32

    pred = pred.reshape(B, 4, rows, 32)    # trailing-dim splits -> views
    tgt = tgt.reshape(B, rows, 128)
    wgt = wgt.reshape(B, rows, 32)

    # ---- row-tile size ------------------------------------------------------
    # Aim for >= 2 grid steps when B == 1 so v7x megacore has something to
    # split; otherwise one tile per batch when it fits.
    min_tiles = 1 if B >= 2 else min(2, rows)
    bt = min(pl.cdiv(rows, min_tiles), _MAX_BLOCK_ROWS)
    if bt < rows:
        bt = _round_up(bt, 8)       # multi-tile -> keep sublane-aligned blocks
    num_r = pl.cdiv(rows, bt)
    grid = (B, num_r)

    kernel = functools.partial(_iou_loss_kernel, rows_total=rows)

    n_elem = B * hw_pad
    cost = pl.CostEstimate(
        flops=(32 + 4 * 2 * 128) * n_elem,   # elementwise + de-interleave matmuls
        transcendentals=2 * n_elem,
        bytes_accessed=36 * n_elem + 2 * B * num_r * 32 * 4,
    )

    out_sum, out_cnt = pl.pallas_call(
        kernel,
        out_shape=(
            jax.ShapeDtypeStruct((B * num_r, 1, 32), f32),
            jax.ShapeDtypeStruct((B * num_r, 1, 32), f32),
        ),
        grid_spec=pl.GridSpec(
            grid=grid,
            in_specs=[
                pl.BlockSpec((1, 4, bt, 32), lambda b, r: (b, 0, r, 0)),
                pl.BlockSpec((1, bt, 128), lambda b, r: (b, r, 0)),
                pl.BlockSpec((1, bt, 32), lambda b, r: (b, r, 0)),
            ],
            out_specs=[
                pl.BlockSpec((1, 1, 32), lambda b, r: (b * num_r + r, 0, 0)),
                pl.BlockSpec((1, 1, 32), lambda b, r: (b * num_r + r, 0, 0)),
            ],
        ),
        compiler_params=pltpu.CompilerParams(
            dimension_semantics=("parallel", "parallel"),
            vmem_limit_bytes=32 * 1024 * 1024,
        ),
        cost_estimate=cost,
    )(pred, tgt, wgt)

    total = jnp.sum(out_sum)
    count = jnp.sum(out_cnt)
    # Mean over positive rows == masked-sum / count.  The reference asserts on
    # zero positives; we guard the divide and return 0.0 in that case instead.
    return total / jnp.maximum(count, 1.0)


def _reference(bbox_pred, reg_target, reg_weight):
    """Pure-JAX reference mirroring the PyTorch code."""
    pred = jnp.transpose(bbox_pred, (0, 2, 3, 1)).reshape(-1, 4)
    tgt = reg_target.reshape(-1, 4)
    w = reg_weight.reshape(-1)
    mask = (w > 0).astype(jnp.float32)

    pl_, pt, pr, pb = pred[:, 0], pred[:, 1], pred[:, 2], pred[:, 3]
    tl, tt, tr, tb = tgt[:, 0], tgt[:, 1], tgt[:, 2], tgt[:, 3]
    target_area = (tl + tr) * (tt + tb)
    pred_area = (pl_ + pr) * (pt + pb)
    w_i = jnp.minimum(pl_, tl) + jnp.minimum(pr, tr)
    h_i = jnp.minimum(pb, tb) + jnp.minimum(pt, tt)
    area_i = w_i * h_i
    area_u = target_area + pred_area - area_i
    losses = -jnp.log((area_i + 1.0) / (area_u + 1.0))
    return jnp.sum(losses * mask) / jnp.sum(mask)


if __name__ == "__main__":
    key = jax.random.PRNGKey(0)
    k1, k2, k3 = jax.random.split(key, 3)

    B, H, W = 2, 16, 16
    # ltrb-style (non-negative) box offsets, as produced by the tracking head.
    bbox_pred = jnp.abs(jax.random.normal(k1, (B, 4, H, W), dtype=jnp.float32)) * 4.0
    reg_target = jnp.abs(jax.random.normal(k2, (B, H, W, 4), dtype=jnp.float32)) * 4.0
    # ~30% positive locations.
    reg_weight = (jax.random.uniform(k3, (B, H, W)) < 0.3).astype(jnp.float32)

    out = iou_loss(bbox_pred, reg_target, reg_weight)
    out = jax.block_until_ready(out)

    ref = _reference(bbox_pred, reg_target, reg_weight)
    assert jnp.allclose(out, ref, rtol=1e-5, atol=1e-5), (out, ref)

    print("KERNEL_OK")
</pallas_src>

<mosaic_0001>
module attributes {stable_mosaic.version = 11 : i64} {
  func.func @_iou_loss_kernel(%arg0: i32, %arg1: i32, %arg2: memref<1x4x8x32xf32, #tpu.memory_space<vmem>>, %arg3: memref<1x8x128xf32, #tpu.memory_space<vmem>>, %arg4: memref<1x8x32xf32, #tpu.memory_space<vmem>>, %arg5: memref<1x1x32xf32, #tpu.memory_space<vmem>>, %arg6: memref<1x1x32xf32, #tpu.memory_space<vmem>>) attributes {dimension_semantics = [#tpu.dimension_semantics<parallel>, #tpu.dimension_semantics<parallel>], iteration_bounds = array<i64: 2, 1>, scalar_prefetch = 0 : i64, scratch_operands = 0 : i64, tpu.core_type = #tpu.core_type<tc>, window_params = [{transform_indices = @transform_0, window_bounds = array<i64: 1, 4, 8, 32>}, {transform_indices = @transform_1, window_bounds = array<i64: 1, 8, 128>}, {transform_indices = @transform_2, window_bounds = array<i64: 1, 8, 32>}, {transform_indices = @transform_3, window_bounds = array<i64: 1, 1, 32>}, {transform_indices = @transform_4, window_bounds = array<i64: 1, 1, 32>}]} {
    %c0 = arith.constant 0 : index
    %c0_0 = arith.constant 0 : index
    %c0_1 = arith.constant 0 : index
    %c0_2 = arith.constant 0 : index
    %0 = vector.load %arg2[%c0, %c0_0, %c0_1, %c0_2] : memref<1x4x8x32xf32, #tpu.memory_space<vmem>>, vector<1x4x8x32xf32>
    %1 = vector.shape_cast %0 : vector<1x4x8x32xf32> to vector<4x8x32xf32>
    %c0_3 = arith.constant 0 : index
    %c0_4 = arith.constant 0 : index
    %c0_5 = arith.constant 0 : index
    %2 = vector.load %arg3[%c0_3, %c0_4, %c0_5] : memref<1x8x128xf32, #tpu.memory_space<vmem>>, vector<1x8x128xf32>
    %3 = vector.shape_cast %2 : vector<1x8x128xf32> to vector<8x128xf32>
    %c0_6 = arith.constant 0 : index
    %c0_7 = arith.constant 0 : index
    %c0_8 = arith.constant 0 : index
    %4 = vector.load %arg4[%c0_6, %c0_7, %c0_8] : memref<1x8x32xf32, #tpu.memory_space<vmem>>, vector<1x8x32xf32>
    %5 = vector.shape_cast %4 : vector<1x8x32xf32> to vector<8x32xf32>
    %6 = vector.extract_strided_slice %1 {offsets = [0, 0, 0], sizes = [1, 8, 32], strides = [1, 1, 1]} : vector<4x8x32xf32> to vector<1x8x32xf32>
    %7 = vector.shape_cast %6 : vector<1x8x32xf32> to vector<8x32xf32>
    %8 = vector.extract_strided_slice %1 {offsets = [1, 0, 0], sizes = [1, 8, 32], strides = [1, 1, 1]} : vector<4x8x32xf32> to vector<1x8x32xf32>
    %9 = vector.shape_cast %8 : vector<1x8x32xf32> to vector<8x32xf32>
    %10 = vector.extract_strided_slice %1 {offsets = [2, 0, 0], sizes = [1, 8, 32], strides = [1, 1, 1]} : vector<4x8x32xf32> to vector<1x8x32xf32>
    %11 = vector.shape_cast %10 : vector<1x8x32xf32> to vector<8x32xf32>
    %12 = vector.extract_strided_slice %1 {offsets = [3, 0, 0], sizes = [1, 8, 32], strides = [1, 1, 1]} : vector<4x8x32xf32> to vector<1x8x32xf32>
    %13 = vector.shape_cast %12 : vector<1x8x32xf32> to vector<8x32xf32>
    %14 = tpu.iota {dimensions = array<i32: 0>} : vector<128x32xi32>
    %15 = tpu.iota {dimensions = array<i32: 1>} : vector<128x32xi32>
    %c4_i32 = arith.constant 4 : i32
    %16 = vector.broadcast %c4_i32 : i32 to vector<128x32xi32>
    %17 = arith.muli %16, %15 : vector<128x32xi32>
    %c0_i32 = arith.constant 0 : i32
    %18 = vector.broadcast %c0_i32 : i32 to vector<128x32xi32>
    %19 = arith.addi %17, %18 : vector<128x32xi32>
    %20 = arith.cmpi eq, %14, %19 : vector<128x32xi32>
    %21 = arith.extui %20 : vector<128x32xi1> to vector<128x32xi32>
    %22 = arith.sitofp %21 : vector<128x32xi32> to vector<128x32xf32>
    %cst = arith.constant dense<0.000000e+00> : vector<8x32xf32>
    %23 = tpu.matmul %3, %22, %cst {dimension_numbers = #tpu.dot_dimension_numbers<[1], [0], [0], [1], [0, 0, 1, 1], [], []>, precision = #tpu.contract_precision<fp32>} : vector<8x128xf32>, vector<128x32xf32>, vector<8x32xf32> -> vector<8x32xf32>
    %c4_i32_9 = arith.constant 4 : i32
    %24 = vector.broadcast %c4_i32_9 : i32 to vector<128x32xi32>
    %25 = arith.muli %24, %15 : vector<128x32xi32>
    %c1_i32 = arith.constant 1 : i32
    %26 = vector.broadcast %c1_i32 : i32 to vector<128x32xi32>
    %27 = arith.addi %25, %26 : vector<128x32xi32>
    %28 = arith.cmpi eq, %14, %27 : vector<128x32xi32>
    %29 = arith.extui %28 : vector<128x32xi1> to vector<128x32xi32>
    %30 = arith.sitofp %29 : vector<128x32xi32> to vector<128x32xf32>
    %cst_10 = arith.constant dense<0.000000e+00> : vector<8x32xf32>
    %31 = tpu.matmul %3, %30, %cst_10 {dimension_numbers = #tpu.dot_dimension_numbers<[1], [0], [0], [1], [0, 0, 1, 1], [], []>, precision = #tpu.contract_precision<fp32>} : vector<8x128xf32>, vector<128x32xf32>, vector<8x32xf32> -> vector<8x32xf32>
    %c4_i32_11 = arith.constant 4 : i32
    %32 = vector.broadcast %c4_i32_11 : i32 to vector<128x32xi32>
    %33 = arith.muli %32, %15 : vector<128x32xi32>
    %c2_i32 = arith.constant 2 : i32
    %34 = vector.broadcast %c2_i32 : i32 to vector<128x32xi32>
    %35 = arith.addi %33, %34 : vector<128x32xi32>
    %36 = arith.cmpi eq, %14, %35 : vector<128x32xi32>
    %37 = arith.extui %36 : vector<128x32xi1> to vector<128x32xi32>
    %38 = arith.sitofp %37 : vector<128x32xi32> to vector<128x32xf32>
    %cst_12 = arith.constant dense<0.000000e+00> : vector<8x32xf32>
    %39 = tpu.matmul %3, %38, %cst_12 {dimension_numbers = #tpu.dot_dimension_numbers<[1], [0], [0], [1], [0, 0, 1, 1], [], []>, precision = #tpu.contract_precision<fp32>} : vector<8x128xf32>, vector<128x32xf32>, vector<8x32xf32> -> vector<8x32xf32>
    %c4_i32_13 = arith.constant 4 : i32
    %40 = vector.broadcast %c4_i32_13 : i32 to vector<128x32xi32>
    %41 = arith.muli %40, %15 : vector<128x32xi32>
    %c3_i32 = arith.constant 3 : i32
    %42 = vector.broadcast %c3_i32 : i32 to vector<128x32xi32>
    %43 = arith.addi %41, %42 : vector<128x32xi32>
    %44 = arith.cmpi eq, %14, %43 : vector<128x32xi32>
    %45 = arith.extui %44 : vector<128x32xi1> to vector<128x32xi32>
    %46 = arith.sitofp %45 : vector<128x32xi32> to vector<128x32xf32>
    %cst_14 = arith.constant dense<0.000000e+00> : vector<8x32xf32>
    %47 = tpu.matmul %3, %46, %cst_14 {dimension_numbers = #tpu.dot_dimension_numbers<[1], [0], [0], [1], [0, 0, 1, 1], [], []>, precision = #tpu.contract_precision<fp32>} : vector<8x128xf32>, vector<128x32xf32>, vector<8x32xf32> -> vector<8x32xf32>
    %48 = arith.addf %23, %39 : vector<8x32xf32>
    %49 = arith.addf %31, %47 : vector<8x32xf32>
    %50 = arith.mulf %48, %49 : vector<8x32xf32>
    %51 = arith.addf %7, %11 : vector<8x32xf32>
    %52 = arith.addf %9, %13 : vector<8x32xf32>
    %53 = arith.mulf %51, %52 : vector<8x32xf32>
    %54 = arith.minimumf %7, %23 : vector<8x32xf32>
    %55 = arith.minimumf %11, %39 : vector<8x32xf32>
    %56 = arith.addf %54, %55 : vector<8x32xf32>
    %57 = arith.minimumf %13, %47 : vector<8x32xf32>
    %58 = arith.minimumf %9, %31 : vector<8x32xf32>
    %59 = arith.addf %57, %58 : vector<8x32xf32>
    %60 = arith.mulf %56, %59 : vector<8x32xf32>
    %61 = arith.addf %50, %53 : vector<8x32xf32>
    %62 = arith.subf %61, %60 : vector<8x32xf32>
    %63 = tpu.iota {dimensions = array<i32: 0>} : vector<8x32xi32>
    %c8_i32 = arith.constant 8 : i32
    %64 = arith.muli %arg1, %c8_i32 : i32
    %c8_i32_15 = arith.constant 8 : i32
    %65 = arith.subi %c8_i32_15, %64 : i32
    %cst_16 = arith.constant 0.000000e+00 : f32
    %66 = vector.broadcast %cst_16 : f32 to vector<8x32xf32>
    %67 = arith.cmpf ogt, %5, %66 : vector<8x32xf32>
    %68 = vector.broadcast %65 : i32 to vector<8x32xi32>
    %69 = arith.cmpi slt, %63, %68 : vector<8x32xi32>
    %70 = arith.andi %67, %69 : vector<8x32xi1>
    %cst_17 = arith.constant 1.000000e+00 : f32
    %71 = vector.broadcast %cst_17 : f32 to vector<8x32xf32>
    %72 = arith.addf %60, %71 : vector<8x32xf32>
    %cst_18 = arith.constant 1.000000e+00 : f32
    %73 = vector.broadcast %cst_18 : f32 to vector<8x32xf32>
    %74 = arith.select %70, %72, %73 : vector<8x32xi1>, vector<8x32xf32>
    %cst_19 = arith.constant 1.000000e+00 : f32
    %75 = vector.broadcast %cst_19 : f32 to vector<8x32xf32>
    %76 = arith.addf %62, %75 : vector<8x32xf32>
    %cst_20 = arith.constant 1.000000e+00 : f32
    %77 = vector.broadcast %cst_20 : f32 to vector<8x32xf32>
    %78 = arith.select %70, %76, %77 : vector<8x32xi1>, vector<8x32xf32>
    %79 = math.log %78 : vector<8x32xf32>
    %80 = math.log %74 : vector<8x32xf32>
    %81 = arith.subf %79, %80 : vector<8x32xf32>
    %82 = arith.extui %70 : vector<8x32xi1> to vector<8x32xi32>
    %83 = arith.sitofp %82 : vector<8x32xi32> to vector<8x32xf32>
    %84 = arith.mulf %81, %83 : vector<8x32xf32>
    %cst_21 = arith.constant dense<0.000000e+00> : vector<32xf32>
    %85 = vector.multi_reduction <add>, %84, %cst_21 [0] : vector<8x32xf32> to vector<32xf32>
    %86 = vector.shape_cast %85 : vector<32xf32> to vector<1x32xf32>
    %87 = vector.shape_cast %86 : vector<1x32xf32> to vector<1x1x32xf32>
    %c0_22 = arith.constant 0 : index
    %c0_23 = arith.constant 0 : index
    %c0_24 = arith.constant 0 : index
    %88 = vector.load %arg5[%c0_22, %c0_23, %c0_24] : memref<1x1x32xf32, #tpu.memory_space<vmem>>, vector<1x1x32xf32>
    tpu.vector_store %arg5[%c0_22, %c0_23, %c0_24], %87 {strides = array<i32>} : memref<1x1x32xf32, #tpu.memory_space<vmem>>, vector<1x1x32xf32>,
    %cst_25 = arith.constant dense<0.000000e+00> : vector<32xf32>
    %89 = vector.multi_reduction <add>, %83, %cst_25 [0] : vector<8x32xf32> to vector<32xf32>
    %90 = vector.shape_cast %89 : vector<32xf32> to vector<1x32xf32>
    %91 = vector.shape_cast %90 : vector<1x32xf32> to vector<1x1x32xf32>
    %c0_26 = arith.constant 0 : index
    %c0_27 = arith.constant 0 : index
    %c0_28 = arith.constant 0 : index
    %92 = vector.load %arg6[%c0_26, %c0_27, %c0_28] : memref<1x1x32xf32, #tpu.memory_space<vmem>>, vector<1x1x32xf32>
    tpu.vector_store %arg6[%c0_26, %c0_27, %c0_28], %91 {strides = array<i32>} : memref<1x1x32xf32, #tpu.memory_space<vmem>>, vector<1x1x32xf32>,
    return
  }
  func.func @transform_0(%arg0: i32, %arg1: i32) -> (i32, i32, i32, i32) {
    %c0_i32 = arith.constant 0 : i32
    %c0_i32_0 = arith.constant 0 : i32
    %c0_i32_1 = arith.constant 0 : i32
    return %arg0, %c0_i32, %arg1, %c0_i32_0 : i32, i32, i32, i32
  }
  func.func @transform_1(%arg0: i32, %arg1: i32) -> (i32, i32, i32) {
    %c0_i32 = arith.constant 0 : i32
    %c0_i32_0 = arith.constant 0 : i32
    return %arg0, %arg1, %c0_i32 : i32, i32, i32
  }
  func.func @transform_2(%arg0: i32, %arg1: i32) -> (i32, i32, i32) {
    %c0_i32 = arith.constant 0 : i32
    %c0_i32_0 = arith.constant 0 : i32
    return %arg0, %arg1, %c0_i32 : i32, i32, i32
  }
  func.func @transform_3(%arg0: i32, %arg1: i32) -> (i32, i32, i32) {
    %c1_i32 = arith.constant 1 : i32
    %0 = arith.muli %arg0, %c1_i32 : i32
    %1 = arith.addi %0, %arg1 : i32
    %c0_i32 = arith.constant 0 : i32
    %c0_i32_0 = arith.constant 0 : i32
    %c0_i32_1 = arith.constant 0 : i32
    return %1, %c0_i32, %c0_i32_0 : i32, i32, i32
  }
  func.func @transform_4(%arg0: i32, %arg1: i32) -> (i32, i32, i32) {
    %c1_i32 = arith.constant 1 : i32
    %0 = arith.muli %arg0, %c1_i32 : i32
    %1 = arith.addi %0, %arg1 : i32
    %c0_i32 = arith.constant 0 : i32
    %c0_i32_0 = arith.constant 0 : i32
    %c0_i32_1 = arith.constant 0 : i32
    return %1, %c0_i32, %c0_i32_0 : i32, i32, i32
  }
}

</mosaic_0001>

<bundles_post_ra>
// kernel: tpu_custom_call.1
= control target key start
LH: loop header
LB: loop body
LE: loop exit
PB: predicated region body
PF: predicated region fallthrough
CT: control target
= control target key end

     0   :  { %s8013_s0 = inlined_call_operand.hbm [shape: f32[2,4,8,32], index: 0, kind: input, shape index: {}]   ;;  %s8014_s1 = inlined_call_operand.hbm [shape: f32[2,8,128], index: 1, kind: input, shape index: {}]   ;;  %s8015_s2 = inlined_call_operand.hbm [shape: f32[2,8,32], index: 2, kind: input, shape index: {}]   ;;  %s8016_s3 = inlined_call_operand.hbm [shape: f32[2,1,32], index: 3, kind: output, shape index: {0}]   ;;  %s8017_s4 = inlined_call_operand.hbm [shape: f32[2,1,32], index: 4, kind: output, shape index: {1}]  }
   0x1   :  { %8178 = sst [smem:[#allocation66_spill]] %s8013_s0 }
   0x2   :  { %8179 = sst [smem:[#allocation67_spill]] %s8014_s1 }
   0x3   :  { %10 = vsyncpa [#allocation3], 0 }
   0x4   :  { %12 = vsyncpa [#allocation3 + $0x1], 0 }
   0x5   :  { %13 = vsyncpa [#allocation6], 0 }
   0x6   :  { %15 = vsyncpa [#allocation6 + $0x1], 0 }
   0x7   :  { %16 = vsyncpa [#allocation4], 0 }
   0x8   :  { %18 = vsyncpa [#allocation4 + $0x1], 0 }
   0x9   :  { %19 = vsyncpa [#allocation10], 0 }
   0xa   :  { %21 = vsyncpa [#allocation10 + $0x1], 0  ;;  %s5816_s15 = smov 0   ;;  %s5818_s16 = smov 0  }
   0xb   :  { %s5820_s17 = smov 0   ;;  %s5822_s18 = smov 0  }
   0xc   :  { %s5824_s19 = smov 0   ;;  %s5826_s20 = smov 0  }
   0xd LB: > { %8180 = sst [smem:[#allocation15_spill]] %s5766_s17  ;;  %s5847_s21 = sadd.s32 4294967295, %s5778_s20   ;;  %s5778_s20 = sphi %s5826_s20, %s27_s20   ;;  %s5774_s19 = sphi %s5824_s19, %s8538_s19   ;;  %s5770_s18 = sphi %s5822_s18, %s8537_s18   ;;  %s5766_s17 = sphi %s5820_s17, %s8536_s17   ;;  %s5762_s16 = sphi %s5818_s16, %s8540_s16   ;;  %s5758_s15 = sphi %s5816_s15, %s8539_s15  }
   0xe   : > { %8181 = sst [smem:[#allocation16_spill]] %s5774_s19  ;;  %s3343_s22 = sadd.s32 4294967294, %s5778_s20  }
   0xf   : > { %s39_s23 = sadd.s32 1, %s5774_s19  ;;  %s48_s24 = sadd.s32 1, %s5766_s17 }
  0x10   : > { %p41_p0 = scmp.ge.s32.totalorder %s39_s23, 2  ;;  %p55_p1 = scmp.ne.s32.totalorder %s5766_s17, %s5762_s16 }
  0x11   : > { %p56_p2 = scmp.eq.s32.totalorder %s5778_s20, 0  ;;  %p61_p3 = scmp.ne.s32.totalorder %s5762_s16, %s5758_s15 }
  0x12   : > { %s8542_s23 = smov (%p41_p0, %s39_s23), 0  ;;  %p62_p5 = scmp.eq.s32.totalorder %s5847_s21, 0 }
  0x13   : > { %8182 = sst [smem:[#allocation17_spill]] %s8542_s23  ;;  %p5859_p4 = por %p56_p2, %p55_p1 }
  0x14   : > { %s43_s26 = ssub.s32 %s5774_s19, %s8542_s23  ;;  %p143_p6 = scmp.eq.s32.totalorder %s5847_s21, 1 }
  0x15   : > { %p46_p7 = scmp.eq.s32.totalorder %s43_s26, 0  ;;  %p5867_p8 = por %p62_p5, %p61_p3 }
  0x16   : > { %p5871_p9 = por %p143_p6, %p55_p1  ;;  %p149_p10 = scmp.eq.s32.totalorder %s3343_s22, 1 }
  0x17   : > { %s8184_s27 = scalar_select %p5867_p8, 1, 0 }
  0x18   : > { %s8185_s28 = scalar_select %p5871_p9, 1, 0 }
  0x19   : > { %s5876_s29 = scalar_select %p46_p7, %s5766_s17, %s48_s24  }
  0x1a   : > { %p5878_p11 = por %p149_p10, %p61_p3  ;;  %p5510_p13 = scmp.lt.s32.totalorder %s5778_s20, 2 }
  0x1b   : > { %8186 = sst [smem:[#allocation18_spill]] %s5876_s29  ;;  %s5885_s5 = sand.u32 1, %s5766_s17  }
  0x1c   : > { %s8187_s30 = scalar_select %p5878_p11, 1, 0 }
  0x1d   : > { %s219_s6 = sand.u32 1, %s5778_s20   ;;  %s8019_s7 = sshll.u32 %s5885_s5, 3 }
  0x1e   : > { %p5891_p0 = pnand %p5510_p13, %p5859_p4  ;;  %s3350_s9 = sshll.u32 %s5774_s19, 7 }
  0x1f   : > { %s8189_s1 = sld [smem:[#allocation67_spill]]  ;;  %s223_s13 = scalar_lea.vmem [#allocation5], %s8019_s7 }
  0x20   : > { %s8188_s8 = scalar_select %p5891_p0, 1, 0 }
  0x21   : > { %s231_s14 = sshll.u32 %s223_s13, 4  ;;  %s5908_s25 = scalar_lea.hbm %s8015_s2, %s3350_s9  ;;  %s5903_s14 = int_to_ptr.vmem [resolvable:$true] %s231_s14 }
  0x22   : > { %s5910_s26 = scalar_lea.sflag [#allocation6], %s219_s6  ;;  %p5916_p2 = pneg %p5891_p0 }
  0x25   : > { %s5899_s12 = scalar_lea.hbm %s8189_s1, %s3350_s9  ;;  %s5575_s7 = scalar_lea.hbm %s8189_s1, 256 }
  0x26   : > { %s5570_s23 = scalar_lea.hbm %s5899_s12, 128  ;;  %p5576_p5 = scmp.lt.u32.totalorder %s5899_s12, %s8189_s1 }
  0x27   : > { %p5571_p1 = scmp.ne.s32.totalorder %s5899_s12, %s5570_s23  ;;  %p5577_p6 = scmp.lt.u32.totalorder %s5575_s7, %s5570_s23 }
  0x28   : > { %p5579_p10 = scmp.lt.u32.totalorder %s5570_s23, %s5899_s12 }
  0x29   : > { %p5573_p3 = pnand %p5916_p2, %p5571_p1  ;;  %p5578_p7 = por %p5577_p6, %p5576_p5 }
  0x2b   : > { %p5574_p4 = pneg %p5573_p3  ;;  %p5580_p13 = por %p5579_p10, %p5578_p7 }
  0x2d   : > { %p5581_p12 = pnand %p5580_p13, %p5574_p4 }
  0x2f   : > { %5584 = shalt.err (!%p5581_p12)
}
  0x30   : > { %s5585_s6 = scalar_lea.vmem %s5903_s14, 128  ;;  %s5780_s24 = smov [#allocation5]  }
  0x31   : > { %p5586_p1 = scmp.ne.s32.totalorder %s5903_s14, %s5585_s6  ;;  %s5590_s11 = sshll.u32 %s5780_s24, 4  ;;  %s5591_s11 = int_to_ptr.vmem [resolvable:$false] %s5590_s11 }
  0x32   : > { %s5592_s13 = scalar_lea.vmem %s5591_s11, 256  ;;  %p5593_p9 = scmp.lt.s32.totalorder %s5903_s14, %s5591_s11 }
  0x33   : > { %p5588_p3 = pnand %p5586_p1, %p5916_p2  ;;  %p5594_p8 = scmp.lt.s32.totalorder %s5592_s13, %s5585_s6 }
  0x35   : > { %p5589_p11 = pneg %p5588_p3  ;;  %p5595_p5 = por %p5594_p8, %p5593_p9 }
  0x37   : > { %p5596_p6 = pnand %p5595_p5, %p5589_p11 }
  0x39   : > { %5599 = shalt.err (!%p5596_p6)
}
  0x3a   : > { %5499 = dma.hbm_to_vmem [thread:$0]  (!%p5891_p0), %s5899_s12, 128, %s5903_s14, %s5910_s26  }
  0x3b   : > { %p3353_p12 = scmp.ge.s32.totalorder %s5778_s20, 1  ;;  %p255_p4 = scmp.lt.s32.totalorder %s5778_s20, 3 }
  0x3c   : > { %s3346_s7 = sshll.u32 %s5885_s5, 5  ;;  %s3618_s22 = sshll.u32 %s5774_s19, 9 }
  0x3d   : > { %p5942_p7 = pnand %p3353_p12, %p255_p4  ;;  %s8192_s0 = sld [smem:[#allocation66_spill]] }
  0x3e   : > { %s201_s11 = scalar_lea.vmem [#allocation2], %s3346_s7  ;;  %s198_s12 = scalar_lea.sflag [#allocation3], %s5885_s5 }
  0x3f   : > { %s8191_s23 = scalar_select %p5942_p7, 1, 0 }
  0x40   : > { %s209_s13 = sshll.u32 %s201_s11, 4  ;;  %s5953_s13 = int_to_ptr.vmem [resolvable:$true] %s209_s13 }
  0x43   : > { %s5951_s24 = scalar_lea.hbm %s8192_s0, %s3618_s22  ;;  %s5605_s9 = scalar_lea.hbm %s8192_s0, 1024 }
  0x44   : > { %s5600_s14 = scalar_lea.hbm %s5951_s24, 512  ;;  %p5606_p10 = scmp.lt.u32.totalorder %s5951_s24, %s8192_s0 }
  0x45   : > { %p5601_p8 = scmp.ne.s32.totalorder %s5951_s24, %s5600_s14  ;;  %p5607_p13 = scmp.lt.u32.totalorder %s5605_s9, %s5600_s14 }
  0x46   : > { %p5609_p3 = scmp.lt.u32.totalorder %s5600_s14, %s5951_s24 }
  0x47   : > { %p5603_p9 = pnand %p5601_p8, %p5916_p2  ;;  %p5608_p1 = por %p5607_p13, %p5606_p10 }
  0x49   : > { %p5604_p11 = pneg %p5603_p9  ;;  %p5610_p5 = por %p5609_p3, %p5608_p1 }
  0x4b   : > { %p5611_p6 = pnand %p5610_p5, %p5604_p11 }
  0x4d   : > { %5614 = shalt.err (!%p5611_p6)
}
  0x4e   : > { %s5615_s7 = scalar_lea.vmem %s5953_s13, 512  ;;  %s5781_s1 = smov [#allocation2]  }
  0x4f   : > { %p5616_p12 = scmp.ne.s32.totalorder %s5953_s13, %s5615_s7  ;;  %s5620_s19 = sshll.u32 %s5781_s1, 4  ;;  %s5621_s19 = int_to_ptr.vmem [resolvable:$false] %s5620_s19 }
  0x50   : > { %s5622_s11 = scalar_lea.vmem %s5621_s19, 1024  ;;  %p5623_p9 = scmp.lt.s32.totalorder %s5953_s13, %s5621_s19 }
  0x51   : > { %p5618_p4 = pnand %p5616_p12, %p5916_p2  ;;  %p5624_p7 = scmp.lt.s32.totalorder %s5622_s11, %s5615_s7 }
  0x53   : > { %p5619_p8 = pneg %p5618_p4  ;;  %p5625_p10 = por %p5624_p7, %p5623_p9 }
  0x55   : > { %p5626_p13 = pnand %p5625_p10, %p5619_p8 }
  0x57   : > { %5629 = shalt.err (!%p5626_p13)
}
  0x58   : > { %s5782_s14 = smov 128   ;;  %s5783_s9 = smov 8  }
  0x59   : > { %5496 = dma.hbm_to_vmem [thread:$0]  (!%p5891_p0), %s5951_s24, 512, %s5953_s13, %s198_s12, %s5782_s14, %s5782_s14, %s5783_s9  }
  0x5a   : > { %s8193_s22 = sshll.u32 %s5885_s5, 3  ;;  %s5630_s1 = scalar_lea.hbm %s5908_s25, 128 }
  0x5b   : > { %s242_s6 = scalar_lea.vmem [#allocation7], %s8193_s22  ;;  %p5631_p7 = scmp.ne.s32.totalorder %s5908_s25, %s5630_s1 }
  0x5c   : > { %s250_s7 = sshll.u32 %s242_s6, 4  ;;  %s5635_s0 = scalar_lea.hbm %s8015_s2, 256  ;;  %s251_s7 = int_to_ptr.vmem [resolvable:$true] %s250_s7 }
  0x5d   : > { %p5633_p11 = pnand %p5631_p7, %p5916_p2  ;;  %p5636_p3 = scmp.lt.u32.totalorder %s5908_s25, %s8015_s2 }
  0x5e   : > { %p5637_p5 = scmp.lt.u32.totalorder %s5635_s0, %s5630_s1  ;;  %p5639_p12 = scmp.lt.u32.totalorder %s5630_s1, %s5908_s25 }
  0x5f   : > { %p5634_p1 = pneg %p5633_p11 }
  0x60   : > { %p5638_p6 = por %p5637_p5, %p5636_p3 }
  0x62   : > { %p5640_p4 = por %p5639_p12, %p5638_p6 }
  0x64   : > { %p5641_p8 = pnand %p5640_p4, %p5634_p1 }
  0x66   : > { %5644 = shalt.err (!%p5641_p8)
}
  0x67   : > { %s5645_s5 = scalar_lea.vmem %s251_s7, 128  ;;  %s5784_s24 = smov [#allocation7]  }
  0x68   : > { %p5646_p9 = scmp.ne.s32.totalorder %s251_s7, %s5645_s5  ;;  %s5650_s13 = sshll.u32 %s5784_s24, 4  ;;  %s5651_s13 = int_to_ptr.vmem [resolvable:$false] %s5650_s13 }
  0x69   : > { %s5652_s12 = scalar_lea.vmem %s5651_s13, 256  ;;  %p5653_p7 = scmp.lt.s32.totalorder %s251_s7, %s5651_s13 }
  0x6a   : > { %p5648_p10 = pnand %p5646_p9, %p5916_p2  ;;  %p5654_p11 = scmp.lt.s32.totalorder %s5652_s12, %s5645_s5 }
  0x6c   : > { %p5649_p13 = pneg %p5648_p10  ;;  %p5655_p0 = por %p5654_p11, %p5653_p7 }
  0x6e   : > { %p5656_p3 = pnand %p5655_p0, %p5649_p13 }
  0x70   : > { %5659 = shalt.err (!%p5656_p3)
}
  0x71   : > { %p8194_p5 = scmp.ne.s32.totalorder %s8188_s8, 0  ;;  %p8195_p1 = scmp.ne.s32.totalorder %s8191_s23, 0 }
  0x73   : > { %5502 = dma.hbm_to_vmem [thread:$0]  (!%p8194_p5), %s5908_s25, 128, %s251_s7, %s5910_s26  }
  0x74   : > { %259 = sbr.rel (%p8195_p1) target bundleno = 807 (0x327), region = 32 }
  0x7b   : > { %s6002_s0 = sand.u32 1, %s5762_s16   ;;  %p8196_p0 = scmp.ne.s32.totalorder %s8184_s27, 0 }
  0x7c   : > { %s3354_s17 = sshll.u32 %s6002_s0, 5  ;;  %s262_s29 = scalar_lea.sflag [#allocation3], %s6002_s0 }
  0x7d   : > { %s6006_s10 = scalar_lea.vmem [#allocation2], %s3354_s17 }
  0x7e   : > { %5741 = dma.done.wait (%p8196_p0), %s262_s29, 512  }
  0x7f   : > { %5743 = vsyncadd (%p8196_p0), %s262_s29, 4294966784  ;;  %s270_s8 = sand.u32 1, %s5847_s21   ;;  %s3355_s25 = sshll.u32 %s6002_s0, 3  ;;  %v329_v0 = vlaneseq }
  0x80   : > { %s271_s26 = scalar_lea.sflag [#allocation6], %s270_s8  ;;  %s6016_s23 = scalar_lea.vmem [#allocation5], %s3355_s25 }
  0x81   : > { %5745 = dma.done.wait (%p8196_p0), %s271_s26, 256  }
  0x82   : > { %5747 = vsyncadd (%p8196_p0), %s271_s26, 4294967040  ;;  %v8060_v1 = vmov 0.0|0.0   ;;  %v6024_v2 = vshrl.u32 %v329_v0, 7  ;;  %v347_v3 = vand.u32 127, %v329_v0  ;;  %vm8025_vm0 = vmmov 0   ;;  %s283_s21 = scalar_lea.vmem [#allocation7], %s3355_s25 }
  0x83   : > { %4867 = vmatprep.subr.bf16.mxu0 %v8060_v1  ;;  %5011 = vmatprep.subr.bf16.mxu1 %v8060_v1  ;;  %v8042_v4 = vmov 0.0   ;;  %v8202_v11 = vmov 0  ;;  %v8051_v13 = vmov 1.0|1.0   ;;  %v8205_v14 = vmov 0  ;;  %s3614_s27 = sshll.u32 %s5770_s18, 4 }
  0x84   : > { %8197 = vst [vmem:[#allocation19_spill] sm:$0xff] %v6024_v2  ;;  %4059 = vmatprep.mubr.msk.f32.mxu0 %vm8025_vm0, %v8042_v4  ;;  %4269 = vmatprep.mubr.msk.f32.mxu1 %vm8025_vm0, %v8042_v4  ;;  %v6031_v5 = vadd.s32 8, %v6024_v2  ;;  %v6033_v6 = vmul.u32 4, %v347_v3  ;;  %v6036_v7 = vadd.s32 16, %v6024_v2  ;;  %v6039_v8 = vadd.s32 24, %v6024_v2  ;;  %s320_s14 = scalar_lea.vmem [#allocation9], %s6002_s0  ;;  %s7923_s6 = scalar_lea.hbm %s8017_s4, %s3614_s27 }
  0x85   : > { %v8208_v15 = vmov 0  ;;  %v6081_v16 = vadd.s32 32, %v6024_v2  ;;  %v6098_v21 = vadd.s32 40, %v6024_v2  ;;  %v8213_v22 = vmov 0  ;;  %s3191_s7 = sshll.u32 %s320_s14, 4  ;;  %s3164_s1 = scalar_lea.sflag [#allocation10], %s6002_s0  ;;  %s3192_s7 = int_to_ptr.vmem [resolvable:$true] %s3191_s7 }
  0x86   : > { %8198 = vst [vmem:[#allocation20_spill] sm:$0xff] %v6031_v5  ;;  %8199 = vst [vmem:[#allocation21_spill] sm:$0xff] %v6033_v6  ;;  %vm349_vm1 = vcmp.eq.s32.totalorder %v6024_v2, %v6033_v6  ;;  %vm350_vm2 = vcmp.eq.s32.totalorder %v6031_v5, %v6033_v6  ;;  %v6046_v9 = vadd.s32 1, %v6033_v6  ;;  %vm351_vm3 = vcmp.eq.s32.totalorder %v6036_v7, %v6033_v6  ;;  %s5660_s19 = scalar_lea.vmem %s3192_s7, 16  ;;  %p8532_p6 = scmp.ne.s32.totalorder %s8185_s28, 0 }
  0x87   : > { %8200 = vst [vmem:[#allocation22_spill] sm:$0xff] %v6036_v7  ;;  %8201 = vst [vmem:[#allocation23_spill] sm:$0xff] %v6039_v8  ;;  %v3357_v10 = vsel %vm349_vm1, 1.0, %v8042_v4  ;;  %vm352_vm5 = vcmp.eq.s32.totalorder %v6039_v8, %v6033_v6  ;;  %v3358_v12 = vsel %vm350_vm2, 1.0, %v8042_v4  ;;  %v3359_v25 = vsel %vm351_vm3, 1.0, %v8042_v4  ;;  %p5661_p2 = scmp.ne.s32.totalorder %s3192_s7, %s5660_s19  ;;  %s5789_s11 = smov [#allocation9]  }
  0x88   : > { %vm6051_vm4 = vmpackc.low %vm350_vm2, %vm349_vm1  ;;  %vm1039_vm6 = vcmp.eq.s32.totalorder %v6024_v2, %v6046_v9  ;;  %vm1040_vm7 = vcmp.eq.s32.totalorder %v6031_v5, %v6046_v9  ;;  %8211 = vst [vmem:[#allocation27_spill] sm:$0xff] %v6081_v16  ;;  %v6083_v17 = vsub.f32 %v3357_v10, %v3357_v10  ;;  %v6090_v20 = vsub.f32 %v3358_v12, %v3358_v12  ;;  %s5664_s5 = sshll.u32 %s5789_s11, 4  ;;  %s5665_s5 = int_to_ptr.vmem [resolvable:$false] %s5664_s5 }
  0x89   : > { %v8203_v11 = vsel %vm6051_vm4, 4294967295, %v8202_v11  ;;  %4869 = vmatpush3.bf16.msk.msra.mxu0 %vm6051_vm4, %v8051_v13  ;;  %vm6071_vm8 = vmpackc.low %vm352_vm5, %vm351_vm3  ;;  %v3421_v18 = vsel %vm1039_vm6, 1.0, %v8042_v4  ;;  %v3422_v19 = vsel %vm1040_vm7, 1.0, %v8042_v4  ;;  %vm1041_vm10 = vcmp.eq.s32.totalorder %v6036_v7, %v6046_v9  ;;  %8212 = vst [vmem:[#allocation28_spill] sm:$0xff] %v6098_v21  ;;  %p5662_p12 = pnand %p5661_p2, %p8532_p6  ;;  %s5666_s24 = scalar_lea.vmem %s5665_s5, 32 }
  0x8a   : > { %8204 = vst [vmem:[#allocation24_spill] sm:$0xff] %v8203_v11  ;;  %v8206_v14 = vsel %vm6071_vm8, 4294967295, %v8205_v14  ;;  %vm6075_vm9 = vmpackc.low %vm1040_vm7, %vm1039_vm6  ;;  %4870 = vmatprep.subr.bf16.mxu0 %v8060_v1  ;;  %vm1042_vm11 = vcmp.eq.s32.totalorder %v6039_v8, %v6046_v9  ;;  %v6113_v23 = vsub.f32 %v3421_v18, %v3421_v18  ;;  %v6115_v24 = vsub.f32 %v3422_v19, %v3422_v19  ;;  %p5667_p8 = scmp.lt.s32.totalorder %s3192_s7, %s5665_s5  ;;  %p5668_p9 = scmp.lt.s32.totalorder %s5666_s24, %s5660_s19 }
  0x8b   : > { %8207 = vst [vmem:[#allocation25_spill] sm:$0xff] %v8206_v14  ;;  %v8209_v15 = vsel %vm6075_vm9, 4294967295, %v8208_v15  ;;  %5013 = vmatpush3.bf16.msk.msra.mxu1 %vm6075_vm9, %v8051_v13  ;;  %vm6109_vm12 = vmpackc.low %vm1042_vm11, %vm1041_vm10  ;;  %vm353_vm13 = vcmp.eq.s32.totalorder %v6081_v16, %v6033_v6  ;;  %v8036_v26 = vand.u32 4294901760, %v6083_v17  ;;  %v6129_v27 = vadd.s32 48, %v6024_v2  ;;  %p5663_p4 = pneg %p5662_p12 }
  0x8c   : > { %8210 = vst [vmem:[#allocation26_spill] sm:$0xff] %v8209_v15  ;;  %5014 = vmatprep.subr.bf16.mxu1 %v8060_v1  ;;  %v8214_v22 = vsel %vm6109_vm12, 4294967295, %v8213_v22  ;;  %v8035_v28 = vand.u32 4294901760, %v6090_v20  ;;  %v3360_v29 = vsel %vm352_vm5, 1.0, %v8042_v4  ;;  %vm354_vm14 = vcmp.eq.s32.totalorder %v6098_v21, %v6033_v6  ;;  %p5669_p10 = por %p5668_p9, %p5667_p8 }
  0x8d   : > { %4872 = vmatpush3.bf16.msk.msra.mxu0 %vm6071_vm8, %v8051_v13  ;;  %8215 = vst [vmem:[#allocation29_spill] sm:$0xff] %v8214_v22  ;;  %8216 = vst [vmem:[#allocation30_spill] sm:$0xff] %v6129_v27  ;;  %v6140_v30 = vadd.s32 56, %v6024_v2  ;;  %v6142_v31 = vsub.f32 %v3359_v25, %v3359_v25  ;;  %v8218_v32 = vmov 0  ;;  %v8034_v33 = vand.u32 4294901760, %v6113_v23 }
  0x8e   : > { %4873 = vmatprep.subr.bf16.mxu0 %v8060_v1  ;;  %vm6150_vm15 = vmpackc.low %vm354_vm14, %vm353_vm13  ;;  %v8031_v34 = vand.u32 4294901760, %v6115_v24  ;;  %vm1043_vm1 = vcmp.eq.s32.totalorder %v6081_v16, %v6046_v9  ;;  %v6164_v35 = vsub.f32 %v6083_v17, %v8036_v26  ;;  %v6166_v36 = vsub.f32 %v3360_v29, %v3360_v29  ;;  %p5670_p13 = pnand %p5669_p10, %p5663_p4 }
  0x8f   : > { %5016 = vmatpush3.bf16.msk.msra.mxu1 %vm6109_vm12, %v8051_v13  ;;  %8217 = vst [vmem:[#allocation31_spill] sm:$0xff] %v6140_v30  ;;  %v8219_v32 = vsel %vm6150_vm15, 4294967295, %v8218_v32  ;;  %vm1044_vm2 = vcmp.eq.s32.totalorder %v6098_v21, %v6046_v9  ;;  %vm355_vm3 = vcmp.eq.s32.totalorder %v6129_v27, %v6033_v6  ;;  %v6176_v37 = vsub.f32 %v6090_v20, %v8035_v28 }
  0x90   : > { %5017 = vmatprep.subr.bf16.mxu1 %v8060_v1  ;;  %8220 = vst [vmem:[#allocation32_spill] sm:$0xff] %v8219_v32  ;;  %vm6184_vm5 = vmpackc.low %vm1044_vm2, %vm1043_vm1  ;;  %v8221_v38 = vmov 0  ;;  %vm356_vm6 = vcmp.eq.s32.totalorder %v6140_v30, %v6033_v6  ;;  %v3423_v40 = vsel %vm1041_vm10, 1.0, %v8042_v4  ;;  %v3424_v41 = vsel %vm1042_vm11, 1.0, %v8042_v4 }
  0x91   : > { %4875 = vmatpush3.bf16.msk.msra.mxu0 %vm6150_vm15, %v8051_v13  ;;  %v8222_v38 = vsel %vm6184_vm5, 4294967295, %v8221_v38  ;;  %vm6208_vm7 = vmpackc.low %vm356_vm6, %vm355_vm3  ;;  %v8224_v42 = vmov 0  ;;  %vm1045_vm10 = vcmp.eq.s32.totalorder %v6129_v27, %v6046_v9  ;;  %v6217_v43 = vsub.f32 %v6113_v23, %v8034_v33 }
  0x92   : > { %4876 = vmatprep.subr.bf16.mxu0 %v8060_v1  ;;  %8223 = vst [vmem:[#allocation33_spill] sm:$0xff] %v8222_v38  ;;  %v8225_v42 = vsel %vm6208_vm7, 4294967295, %v8224_v42  ;;  %v6222_v44 = vsub.f32 %v6115_v24, %v8031_v34  ;;  %v3361_v45 = vsel %vm353_vm13, 1.0, %v8042_v4  ;;  %vm8027_vm11 = vcmp.eq.s32.totalorder %v6140_v30, %v6046_v9 }
  0x93   : > { %5019 = vmatpush3.bf16.msk.msra.mxu1 %vm6184_vm5, %v8051_v13  ;;  %8226 = vst [vmem:[#allocation34_spill] sm:$0xff] %v8225_v42  ;;  %v3362_v48 = vsel %vm354_vm14, 1.0, %v8042_v4  ;;  %vm6246_vm13 = vmpackc.low %vm8027_vm11, %vm1045_vm10  ;;  %v8227_v49 = vmov 0  ;;  %v6252_v50 = vadd.s32 64, %v6024_v2  ;;  %v6255_v52 = vsub.f32 %v3423_v40, %v3423_v40 }
  0x94   : > { %5020 = vmatprep.subr.bf16.mxu1 %v8060_v1  ;;  %v8228_v49 = vsel %vm6246_vm13, 4294967295, %v8227_v49  ;;  %v6257_v53 = vsub.f32 %v3424_v41, %v3424_v41  ;;  %v3425_v54 = vsel %vm1043_vm1, 1.0, %v8042_v4  ;;  %v6263_v55 = vsub.f32 %v3361_v45, %v3361_v45 }
  0x95   : > { %4878 = vmatpush3.bf16.msk.msra.mxu0 %vm6208_vm7, %v8051_v13  ;;  %8229 = vst [vmem:[#allocation35_spill] sm:$0xff] %v8228_v49  ;;  %8230 = vst [vmem:[#allocation36_spill] sm:$0xff] %v6252_v50  ;;  %v6269_v56 = vadd.s32 72, %v6024_v2  ;;  %vm357_vm14 = vcmp.eq.s32.totalorder %v6252_v50, %v6033_v6  ;;  %v6274_v57 = vadd.s32 80, %v6024_v2  ;;  %v6278_v60 = vsub.f32 %v3362_v48, %v3362_v48 }
  0x96   : > { %4879 = vmatprep.subr.bf16.mxu0 %v8060_v1  ;;  %vm8030_vm1 = vcmp.eq.s32.totalorder %v6252_v50, %v6046_v9  ;;  %v3426_v61 = vsel %vm1044_vm2, 1.0, %v8042_v4  ;;  %v6287_v62 = vsub.f32 %v3425_v54, %v3425_v54  ;;  %v3363_v63 = vsel %vm355_vm3, 1.0, %v8042_v4 }
  0x97   : > { %5022 = vmatpush3.bf16.msk.msra.mxu1 %vm6246_vm13, %v8051_v13  ;;  %8231 = vst [vmem:[#allocation37_spill] sm:$0xff] %v6269_v56  ;;  %8232 = vst [vmem:[#allocation38_spill] sm:$0xff] %v6274_v57  ;;  %vm8028_vm0 = vcmp.eq.s32.totalorder %v6269_v56, %v6033_v6  ;;  %vm8029_vm11 = vcmp.eq.s32.totalorder %v6269_v56, %v6046_v9  ;;  %v3364_v0 = vsel %vm356_vm6, 1.0, %v8042_v4  ;;  %v8233_v3 = vmov 0 }
  0x98   : > { %5023 = vmatprep.subr.bf16.mxu1 %v8060_v1  ;;  %vm6307_vm2 = vmpackc.low %vm8028_vm0, %vm357_vm14  ;;  %v6312_v10 = vadd.s32 88, %v6024_v2  ;;  %vm8033_vm3 = vcmp.eq.s32.totalorder %v6274_v57, %v6033_v6  ;;  %v3427_v25 = vsel %vm1045_vm10, 1.0, %v8042_v4  ;;  %v8237_v29 = vmov 0 }
  0x99   : > { %v8234_v3 = vsel %vm6307_vm2, 4294967295, %v8233_v3  ;;  %4881 = vmatpush3.bf16.msk.msra.mxu0 %vm6307_vm2, %v8051_v13  ;;  %vm6332_vm6 = vmpackc.low %vm8029_vm11, %vm8030_vm1  ;;  %vm8037_vm0 = vcmp.eq.s32.totalorder %v6274_v57, %v6046_v9  ;;  %v6348_v45 = vsub.f32 %v3426_v61, %v3426_v61  ;;  %v6350_v48 = vsub.f32 %v3363_v63, %v3363_v63 }
  0x9a   : > { %8235 = vst [vmem:[#allocation39_spill] sm:$0xff] %v8234_v3  ;;  %8236 = vst [vmem:[#allocation40_spill] sm:$0xff] %v6312_v10  ;;  %v8238_v29 = vsel %vm6332_vm6, 4294967295, %v8237_v29  ;;  %4882 = vmatprep.subr.bf16.mxu0 %v8060_v1  ;;  %vm8032_vm10 = vcmp.eq.s32.totalorder %v6312_v10, %v6033_v6  ;;  %v6352_v54 = vsub.f32 %v3364_v0, %v3364_v0  ;;  %v8240_v34 = vmov 0 }
  0x9b   : > { %8239 = vst [vmem:[#allocation41_spill] sm:$0xff] %v8238_v29  ;;  %5025 = vmatpush3.bf16.msk.msra.mxu1 %vm6332_vm6, %v8051_v13  ;;  %vm6360_vm1 = vmpackc.low %vm8032_vm10, %vm8033_vm3  ;;  %vm8243_vm11 = vcmp.eq.s32.totalorder %v6140_v30, %v6046_v9  ;;  %v6369_v63 = vsub.f32 %v3427_v25, %v3427_v25  ;;  %v3365_v0 = vsel %vm357_vm14, 1.0, %v8042_v4  ;;  %vm8244_vm10 = vcmp.eq.s32.totalorder %v6312_v10, %v6046_v9 }
  0x9c   : > { %v8241_v34 = vsel %vm6360_vm1, 4294967295, %v8240_v34  ;;  %5026 = vmatprep.subr.bf16.mxu1 %v8060_v1  ;;  %v3428_v61 = vsel %vm8243_vm11, 1.0, %v8042_v4  ;;  %vm6381_vm3 = vmpackc.low %vm8244_vm10, %vm8037_vm0  ;;  %v8245_v33 = vmov 0  ;;  %v6386_v28 = vadd.s32 96, %v6024_v2 }
  0x9d   : > { %8242 = vst [vmem:[#allocation42_spill] sm:$0xff] %v8241_v34  ;;  %v8246_v33 = vsel %vm6381_vm3, 4294967295, %v8245_v33  ;;  %vm8249_vm11 = vcmp.eq.s32.totalorder %v6269_v56, %v6033_v6  ;;  %vm8250_vm14 = vcmp.eq.s32.totalorder %v6252_v50, %v6046_v9  ;;  %vm8251_vm10 = vcmp.eq.s32.totalorder %v6269_v56, %v6046_v9  ;;  %4884 = vmatpush3.bf16.msk.msra.mxu0 %vm6360_vm1, %v8051_v13 }
  0x9e   : > { %8247 = vst [vmem:[#allocation43_spill] sm:$0xff] %v8246_v33  ;;  %8248 = vst [vmem:[#allocation44_spill] sm:$0xff] %v6386_v28  ;;  %v3366_v25 = vsel %vm8249_vm11, 1.0, %v8042_v4  ;;  %v3429_v26 = vsel %vm8250_vm14, 1.0, %v8042_v4  ;;  %v3430_v59 = vsel %vm8251_vm10, 1.0, %v8042_v4  ;;  %v6404_v58 = vadd.s32 104, %v6024_v2  ;;  %4885 = vmatprep.subr.bf16.mxu0 %v8060_v1 }
  0x9f   : > { %vm8253_vm11 = vcmp.eq.s32.totalorder %v6274_v57, %v6033_v6  ;;  %5028 = vmatpush3.bf16.msk.msra.mxu1 %vm6381_vm3, %v8051_v13  ;;  %v6419_v46 = vadd.s32 112, %v6024_v2  ;;  %v6421_v41 = vsub.f32 %v3428_v61, %v3428_v61  ;;  %v6423_v40 = vsub.f32 %v3365_v0, %v3365_v0 }
  0xa0   : > { %8252 = vst [vmem:[#allocation45_spill] sm:$0xff] %v6404_v58  ;;  %v3367_v51 = vsel %vm8253_vm11, 1.0, %v8042_v4  ;;  %vm8255_vm11 = vcmp.eq.s32.totalorder %v6312_v10, %v6033_v6  ;;  %vm8055_vm0 = vcmp.eq.s32.totalorder %v6404_v58, %v6033_v6  ;;  %5029 = vmatprep.subr.bf16.mxu1 %v8060_v1  ;;  %v6432_v18 = vsub.f32 %v3429_v26, %v3429_v26 }
  0xa1   : > { %8254 = vst [vmem:[#allocation46_spill] sm:$0xff] %v6419_v46  ;;  %v3368_v19 = vsel %vm8255_vm11, 1.0, %v8042_v4  ;;  %vm8256_vm10 = vcmp.eq.s32.totalorder %v6274_v57, %v6046_v9  ;;  %vm8257_vm14 = vcmp.eq.s32.totalorder %v6312_v10, %v6046_v9  ;;  %vm8258_vm11 = vcmp.eq.s32.totalorder %v6386_v28, %v6033_v6  ;;  %v327_v10 = vld [vmem:[%s6016_s23] sm:$0xff] }
  0xa2   : > { %v3431_v61 = vsel %vm8256_vm10, 1.0, %v8042_v4  ;;  %v3432_v0 = vsel %vm8257_vm14, 1.0, %v8042_v4  ;;  %vm6448_vm3 = vmpackc.low %vm8055_vm0, %vm8258_vm11  ;;  %v8259_v26 = vmov 0  ;;  %vm8050_vm1 = vcmp.eq.s32.totalorder %v6404_v58, %v6046_v9 }
  0xa3   : > { %v8260_v26 = vsel %vm6448_vm3, 4294967295, %v8259_v26  ;;  %v6454_v12 = vsub.f32 %v3366_v25, %v3366_v25  ;;  %v6456_v47 = vsub.f32 %v3430_v59, %v3430_v59  ;;  %v6458_v39 = vsub.f32 %v3367_v51, %v3367_v51  ;;  %4887 = vmatpush3.bf16.msk.msra.mxu0 %vm6448_vm3, %v8051_v13 }
  0xa4   : > { %8261 = vst [vmem:[#allocation47_spill] sm:$0xff] %v8260_v26  ;;  %vm8262_vm14 = vcmp.eq.s32.totalorder %v6386_v28, %v6046_v9  ;;  %v8263_v4 = vmov 0  ;;  %v6474_v25 = vadd.s32 120, %v6024_v2  ;;  %v6477_v59 = vsub.f32 %v3368_v19, %v3368_v19  ;;  %4888 = vmatprep.subr.bf16.mxu0 %v8060_v1 }
  0xa5   : > { %vm6469_vm10 = vmpackc.low %vm8050_vm1, %vm8262_vm14  ;;  %vm8059_vm11 = vcmp.eq.s32.totalorder %v6419_v46, %v6033_v6  ;;  %v6489_v56 = vsub.f32 %v3431_v61, %v3431_v61  ;;  %v6491_v51 = vsub.f32 %v3432_v0, %v3432_v0  ;;  %v8267_v61 = vmov 0 }
  0xa6   : > { %v8264_v4 = vsel %vm6469_vm10, 4294967295, %v8263_v4  ;;  %8266 = vst [vmem:[#allocation49_spill] sm:$0xff] %v6474_v25  ;;  %5031 = vmatpush3.bf16.msk.msra.mxu1 %vm6469_vm10, %v8051_v13  ;;  %vm8058_vm1 = vcmp.eq.s32.totalorder %v6474_v25, %v6033_v6  ;;  %vm1054_vm14 = vcmp.eq.s32.totalorder %v6474_v25, %v6046_v9  ;;  %v8270_v13 = vmov 0.0  }
  0xa7   : > { %8265 = vst [vmem:[#allocation48_spill] sm:$0xff] %v8264_v4  ;;  %5032 = vmatprep.subr.bf16.mxu1 %v8060_v1  ;;  %vm6505_vm0 = vmpackc.low %vm8058_vm1, %vm8059_vm11  ;;  %vm8271_vm10 = vcmp.eq.s32.totalorder %v6386_v28, %v6033_v6  ;;  %v8272_v57 = vmov 1.0|1.0   ;;  %vm8273_vm1 = vcmp.eq.s32.totalorder %v6419_v46, %v6046_v9  ;;  %v8274_v1 = vmov 0 }
  0xa8   : > { %v8268_v61 = vsel %vm6505_vm0, 4294967295, %v8267_v61  ;;  %v3369_v50 = vsel %vm8271_vm10, 1.0, %v8270_v13  ;;  %4890 = vmatpush3.bf16.msk.msra.mxu0 %vm6505_vm0, %v8272_v57  ;;  %vm6526_vm11 = vmpackc.low %vm1054_vm14, %vm8273_vm1  ;;  %v6530_v19 = vand.u32 4294901760, %v327_v10  ;;  %v8277_v16 = vmov 0.0|0.0  }
  0xa9   : > { %8269 = vst [vmem:[#allocation50_spill] sm:$0xff] %v8268_v61  ;;  %v8275_v1 = vsel %vm6526_vm11, 4294967295, %v8274_v1  ;;  %4891 = vmatprep.subr.bf16.mxu0 %v8277_v16  ;;  %vm8278_vm1 = vcmp.eq.s32.totalorder %v6404_v58, %v6033_v6  ;;  %v6550_v21 = vsub.f32 %v3369_v50, %v3369_v50  ;;  %v8279_v27 = vand.u32 4294901760, %v6142_v31 }
  0xaa   : > { %8276 = vst [vmem:[#allocation51_spill] sm:$0xff] %v8275_v1  ;;  %5034 = vmatpush3.bf16.msk.msra.mxu1 %vm6526_vm11, %v8272_v57  ;;  %v3370_v0 = vsel %vm8278_vm1, 1.0, %v8270_v13  ;;  %v6547_v30 = vsub.f32 %v327_v10, %v6530_v19  ;;  %v8280_v8 = vand.u32 4294901760, %v6166_v36  ;;  %v8281_v2 = vand.u32 4294901760, %v6255_v52 }
  0xab   : > { %5035 = vmatprep.subr.bf16.mxu1 %v8277_v16  ;;  %v506_v5 = vsub.f32 %v6142_v31, %v8279_v27  ;;  %vm8282_vm10 = vcmp.eq.s32.totalorder %v6386_v28, %v6046_v9  ;;  %v8284_v61 = vand.u32 4294901760, %v6257_v53  ;;  %v8285_v4 = vand.u32 4294901760, %v6263_v55 }
  0xac   : > { %v513_v7 = vsub.f32 %v6166_v36, %v8280_v8  ;;  %v1196_v1 = vsub.f32 %v6255_v52, %v8281_v2  ;;  %v3433_v10 = vsel %vm8282_vm10, 1.0, %v8270_v13  ;;  %v6566_v50 = vand.u32 4294901760, %v6547_v30 }
  0xad   : > { %v1203_v27 = vsub.f32 %v6257_v53, %v8284_v61  ;;  %v520_v8 = vsub.f32 %v6263_v55, %v8285_v4  ;;  %v6574_v26 = vsub.f32 %v3370_v0, %v3370_v0  ;;  %vm8286_vm1 = vcmp.eq.s32.totalorder %v6404_v58, %v6046_v9 }
  0xae   : > { %8283 = vst [vmem:[#allocation52_spill] sm:$0xff] %v6566_v50  ;;  %v3434_v2 = vsel %vm8286_vm1, 1.0, %v8270_v13  ;;  %v8287_v28 = vand.u32 4294901760, %v6278_v60  ;;  %v8288_v34 = vand.u32 4294901760, %v6287_v62  ;;  %v481_v61 = vsub.f32 %v6547_v30, %v6566_v50 }
  0xaf   : > { %v8289_v4 = vand.u32 4294901760, %v6164_v35  ;;  %v8290_v0 = vand.u32 4294901760, %v6176_v37  ;;  %v8291_v49 = vand.u32 4294901760, %v6217_v43  ;;  %v8292_v58 = vand.u32 4294901760, %v6222_v44 }
  0xb0   : > { %v527_v33 = vsub.f32 %v6278_v60, %v8287_v28  ;;  %v1210_v29 = vsub.f32 %v6287_v62, %v8288_v34  ;;  %v8293_v38 = vand.u32 4294901760, %v6348_v45  ;;  %v507_v32 = vand.u32 4294901760, %v506_v5 }
  0xb1   : > { %v4892_v3 = vpack.c.bf16 %v8290_v0, %v8289_v4  ;;  %v5036_v42 = vpack.c.bf16 %v8292_v58, %v8291_v49  ;;  %v514_v22 = vand.u32 4294901760, %v513_v7  ;;  %v1197_v34 = vand.u32 4294901760, %v1196_v1 }
  0xb2   : > { %v1217_v28 = vsub.f32 %v6348_v45, %v8293_v38  ;;  %v1204_v14 = vand.u32 4294901760, %v1203_v27  ;;  %vm8294_vm10 = vcmp.eq.s32.totalorder %v6419_v46, %v6033_v6  ;;  %v6603_v37 = vand.u32 4294901760, %v481_v61 }
  0xb3   : > { %v3371_v35 = vsel %vm8294_vm10, 1.0, %v8270_v13  ;;  %v521_v4 = vand.u32 4294901760, %v520_v8  ;;  %v528_v43 = vand.u32 4294901760, %v527_v33  ;;  %v1211_v0 = vand.u32 4294901760, %v1210_v29 }
  0xb4   : > { %8295 = vst [vmem:[#allocation53_spill] sm:$0xff] %v6603_v37  ;;  %v1218_v44 = vand.u32 4294901760, %v1217_v28  ;;  %v8296_v49 = vand.u32 4294901760, %v6350_v48  ;;  %v8297_v5 = vand.u32 4294901760, %v6352_v54  ;;  %v6612_v38 = vsub.f32 %v3433_v10, %v3433_v10  ;;  %4060 = vmatmul.mubr.f32.vlgmr.msra.gmra.mrb[0].mxu0 %v6603_v37  ;;  %4270 = vmatmul.mubr.f32.vlgmr.msra.gmra.mrb[0].mxu1 %v6603_v37 }
  0xb5   : > { %v8298_v33 = vand.u32 4294901760, %v6369_v63  ;;  %v8299_v27 = vand.u32 4294901760, %v6421_v41  ;;  %v6622_v61 = vsub.f32 %v3434_v2, %v3434_v2  ;;  %vm8300_vm1 = vcmp.eq.s32.totalorder %v6474_v25, %v6033_v6  ;;  %4893 = vmatpush3.bf16.msra.mxu0 %v4892_v3  ;;  %5037 = vmatpush3.bf16.msra.mxu1 %v5036_v42 }
  0xb6   : > { %v534_v58 = vsub.f32 %v6350_v48, %v8296_v49  ;;  %v541_v1 = vsub.f32 %v6352_v54, %v8297_v5  ;;  %v3372_v10 = vsel %vm8300_vm1, 1.0, %v8270_v13  ;;  %v4895_v28 = vpack.c.bf16 %v514_v22, %v507_v32  ;;  %4894 = vmatprep.subr.bf16.mxu0 %v8277_v16  ;;  %5038 = vmatprep.subr.bf16.mxu1 %v8277_v16 }
  0xb7   : > { %v1224_v29 = vsub.f32 %v6369_v63, %v8298_v33  ;;  %v1231_v8 = vsub.f32 %v6421_v41, %v8299_v27  ;;  %v5039_v49 = vpack.c.bf16 %v1204_v14, %v1197_v34  ;;  %v6628_v5 = vsub.f32 %v3371_v35, %v3371_v35 }
  0xb8   : > { %vm8301_vm10 = vcmp.eq.s32.totalorder %v6419_v46, %v6046_v9  ;;  %v3436_v2 = vsel %vm1054_vm14, 1.0, %v8270_v13  ;;  %v4898_v3 = vpack.c.bf16 %v528_v43, %v521_v4  ;;  %v5042_v42 = vpack.c.bf16 %v1218_v44, %v1211_v0 }
  0xb9   : > { %v3435_v33 = vsel %vm8301_vm10, 1.0, %v8270_v13  ;;  %v535_v22 = vand.u32 4294901760, %v534_v58  ;;  %v542_v14 = vand.u32 4294901760, %v541_v1  ;;  %v8302_v32 = vand.u32 4294901760, %v6423_v40  ;;  %4896 = vmatpush3.bf16.msra.mxu0 %v4895_v28  ;;  %5040 = vmatpush3.bf16.msra.mxu1 %v5039_v49 }
  0xba   : > { %vm8303_vm1 = vmmov 0   ;;  %v1225_v9 = vand.u32 4294901760, %v1224_v29  ;;  %v1232_v35 = vand.u32 4294901760, %v1231_v8  ;;  %v8304_v27 = vand.u32 4294901760, %v6454_v12  ;;  %4897 = vmatprep.subr.bf16.mxu0 %v8277_v16  ;;  %5041 = vmatprep.subr.bf16.mxu1 %v8277_v16 }
  0xbb   : > { %v548_v34 = vsub.f32 %v6423_v40, %v8302_v32  ;;  %4094 = vmatprep.mubr.msk.f32.mxu0 %vm8303_vm1, %v8270_v13  ;;  %4304 = vmatprep.mubr.msk.f32.mxu1 %vm8303_vm1, %v8270_v13  ;;  %v8305_v4 = vand.u32 4294901760, %v6432_v18  ;;  %v8306_v44 = vand.u32 4294901760, %v6456_v47  ;;  %v8307_v1 = vand.u32 4294901760, %v6458_v39 }
  0xbc   : > { %v555_v7 = vsub.f32 %v6454_v12, %v8304_v27  ;;  %v8308_v8 = vand.u32 4294901760, %v6477_v59  ;;  %v8309_v28 = vand.u32 4294901760, %v6489_v56  ;;  %v589_v0 = vand.u32 4294901760, %v6628_v5 }
  0xbd   : > { %v1238_v43 = vsub.f32 %v6432_v18, %v8305_v4  ;;  %v1245_v58 = vsub.f32 %v6456_v47, %v8306_v44  ;;  %v562_v29 = vsub.f32 %v6458_v39, %v8307_v1  ;;  %v8310_v44 = vand.u32 4294901760, %v6491_v51  ;;  %4899 = vmatpush3.bf16.msra.mxu0 %v4898_v3  ;;  %5043 = vmatpush3.bf16.msra.mxu1 %v5042_v42 }
  0xbe   : > { %v569_v32 = vsub.f32 %v6477_v59, %v8308_v8  ;;  %v1252_v49 = vsub.f32 %v6489_v56, %v8309_v28  ;;  %v6674_v37 = vsub.f32 %v3372_v10, %v3372_v10  ;;  %v6676_v8 = vsub.f32 %v3435_v33, %v3435_v33  ;;  %4900 = vmatprep.subr.bf16.mxu0 %v8277_v16 }
  0xbf   : > { %v1259_v1 = vsub.f32 %v6491_v51, %v8310_v44  ;;  %v6678_v27 = vsub.f32 %v3436_v2, %v3436_v2  ;;  %v4901_v4 = vpack.c.bf16 %v542_v14, %v535_v22  ;;  %v5045_v25 = vpack.c.bf16 %v1232_v35, %v1225_v9  ;;  %5044 = vmatprep.subr.bf16.mxu1 %v8277_v16 }
  0xc0   : > { %v549_v46 = vand.u32 4294901760, %v548_v34  ;;  %v556_v6 = vand.u32 4294901760, %v555_v7  ;;  %v1239_v50 = vand.u32 4294901760, %v1238_v43  ;;  %v1246_v28 = vand.u32 4294901760, %v1245_v58 }
  0xc1   : > { %v563_v15 = vand.u32 4294901760, %v562_v29  ;;  %v570_v11 = vand.u32 4294901760, %v569_v32  ;;  %v1253_v10 = vand.u32 4294901760, %v1252_v49  ;;  %v1260_v44 = vand.u32 4294901760, %v1259_v1  ;;  %4902 = vmatpush3.bf16.msra.mxu0 %v4901_v4  ;;  %5046 = vmatpush3.bf16.msra.mxu1 %v5045_v25 }
  0xc2   : > { %v8311_v33 = vand.u32 4294901760, %v6550_v21  ;;  %v8312_v22 = vand.u32 4294901760, %v6574_v26  ;;  %v596_v3 = vand.u32 4294901760, %v6674_v37  ;;  %v1279_v42 = vand.u32 4294901760, %v6676_v8  ;;  %4903 = vmatprep.subr.bf16.mxu0 %v8277_v16  ;;  %5047 = vmatprep.subr.bf16.mxu1 %v8277_v16 }
  0xc3   : > { %v1286_v14 = vand.u32 4294901760, %v6678_v27  ;;  %v8313_v34 = vand.u32 4294901760, %v6612_v38  ;;  %v4904_v35 = vpack.c.bf16 %v556_v6, %v549_v46  ;;  %v5048_v43 = vpack.c.bf16 %v1246_v28, %v1239_v50 }
  0xc4   : > { %v576_v2 = vsub.f32 %v6550_v21, %v8311_v33  ;;  %v583_v7 = vsub.f32 %v6574_v26, %v8312_v22  ;;  %v4907_v58 = vpack.c.bf16 %v570_v11, %v563_v15  ;;  %v8314_v29 = vand.u32 4294901760, %v6622_v61 }
  0xc5   : > { %v1266_v9 = vsub.f32 %v6612_v38, %v8313_v34  ;;  %v5051_v49 = vpack.c.bf16 %v1260_v44, %v1253_v10  ;;  %v590_v22 = vsub.f32 %v6628_v5, %v589_v0  ;;  %v597_v6 = vsub.f32 %v6674_v37, %v596_v3  ;;  %4905 = vmatpush3.bf16.msra.mxu0 %v4904_v35 }
  0xc6   : > { %v1273_v32 = vsub.f32 %v6622_v61, %v8314_v29  ;;  %v577_v1 = vand.u32 4294901760, %v576_v2  ;;  %v584_v33 = vand.u32 4294901760, %v583_v7  ;;  %v1280_v46 = vsub.f32 %v6676_v8, %v1279_v42  ;;  %5049 = vmatpush3.bf16.msra.mxu1 %v5048_v43  ;;  %4906 = vmatprep.subr.bf16.mxu0 %v8277_v16 }
  0xc7   : > { %v1267_v57 = vand.u32 4294901760, %v1266_v9  ;;  %v1287_v11 = vsub.f32 %v6678_v27, %v1286_v14  ;;  %v8315_v15 = vand.u32 4294901760, %v6083_v17  ;;  %v8316_v25 = vand.u32 4294901760, %v6090_v20  ;;  %5050 = vmatprep.subr.bf16.mxu1 %v8277_v16 }
  0xc8   : > { %v8318_v4 = vand.u32 4294901760, %v6113_v23  ;;  %v8319_v28 = vand.u32 4294901760, %v6115_v24  ;;  %v8321_v44 = vand.u32 4294901760, %v6142_v31  ;;  %v8322_v2 = vand.u32 4294901760, %v6166_v36 }
  0xc9   : > { %v6707_v50 = vpack.c.bf16 %v8316_v25, %v8315_v15  ;;  %v8324_v34 = vand.u32 4294901760, %v6255_v52  ;;  %v8325_v9 = vand.u32 4294901760, %v6257_v53  ;;  %v1274_v15 = vand.u32 4294901760, %v1273_v32  ;;  %4908 = vmatpush3.bf16.msra.mxu0 %v4907_v58 }
  0xca   : > { %v6713_v10 = vpack.c.bf16 %v8319_v28, %v8318_v4  ;;  %v6719_v7 = vpack.c.bf16 %v8322_v2, %v8321_v44  ;;  %v8327_v25 = vand.u32 4294901760, %v6263_v55  ;;  %v8328_v4 = vand.u32 4294901760, %v6278_v60  ;;  %5052 = vmatpush3.bf16.msra.mxu1 %v5051_v49  ;;  %4909 = vmatprep.subr.bf16.mxu0 %v8277_v16 }
  0xcb   : > { %8317 = vst [vmem:[#allocation54_spill] sm:$0xff] %v6707_v50  ;;  %v6725_v29 = vpack.c.bf16 %v8325_v9, %v8324_v34  ;;  %v8331_v44 = vand.u32 4294901760, %v6348_v45  ;;  %v8334_v34 = vand.u32 4294901760, %v6352_v54  ;;  %v8336_v35 = vand.u32 4294901760, %v6369_v63  ;;  %5053 = vmatprep.subr.bf16.mxu1 %v8277_v16 }
  0xcc   : > { %8320 = vst [vmem:[#allocation55_spill] sm:$0xff] %v6713_v10  ;;  %8323 = vst [vmem:[#allocation56_spill] sm:$0xff] %v6719_v7  ;;  %v6731_v28 = vpack.c.bf16 %v8328_v4, %v8327_v25  ;;  %v8330_v10 = vand.u32 4294901760, %v6287_v62  ;;  %v8333_v7 = vand.u32 4294901760, %v6350_v48  ;;  %v8337_v43 = vand.u32 4294901760, %v6421_v41 }
  0xcd   : > { %8326 = vst [vmem:[#allocation57_spill] sm:$0xff] %v6725_v29  ;;  %v8339_v25 = vand.u32 4294901760, %v6423_v40  ;;  %v6791_v29 = vpack.c.bf16 %v1286_v14, %v1279_v42  ;;  %v1288_v50 = vand.u32 4294901760, %v1287_v11  ;;  %v5063_v42 = vpack.c.bf16 %v6257_v53, %v6255_v52 }
  0xce   : > { %8329 = vst [vmem:[#allocation58_spill] sm:$0xff] %v6731_v28  ;;  %v6737_v2 = vpack.c.bf16 %v8331_v44, %v8330_v10  ;;  %v6743_v9 = vpack.c.bf16 %v8334_v34, %v8333_v7  ;;  %v6751_v32 = vpack.c.bf16 %v8337_v43, %v8336_v35  ;;  %v8340_v10 = vand.u32 4294901760, %v6454_v12 }
  0xcf   : > { %v8342_v44 = vand.u32 4294901760, %v6432_v18  ;;  %v8343_v7 = vand.u32 4294901760, %v6456_v47  ;;  %v8348_v35 = vand.u32 4294901760, %v6489_v56  ;;  %v8349_v43 = vand.u32 4294901760, %v6491_v51 }
  0xd0   : > { %8332 = vst [vmem:[#allocation59_spill] sm:$0xff] %v6737_v2  ;;  %8335 = vst [vmem:[#allocation60_spill] sm:$0xff] %v6743_v9  ;;  %v6757_v4 = vpack.c.bf16 %v8340_v10, %v8339_v25  ;;  %v8345_v9 = vand.u32 4294901760, %v6458_v39  ;;  %v8346_v2 = vand.u32 4294901760, %v6477_v59  ;;  %v8351_v25 = vand.u32 4294901760, %v6550_v21 }
  0xd1   : > { %8338 = vst [vmem:[#allocation61_spill] sm:$0xff] %v6751_v32  ;;  %v6763_v34 = vpack.c.bf16 %v8343_v7, %v8342_v44  ;;  %v6775_v32 = vpack.c.bf16 %v8349_v43, %v8348_v35  ;;  %v8352_v10 = vand.u32 4294901760, %v6574_v26  ;;  %v8353_v44 = vand.u32 4294901760, %v6612_v38 }
  0xd2   : > { %8341 = vst [vmem:[#allocation62_spill] sm:$0xff] %v6757_v4  ;;  %v6769_v28 = vpack.c.bf16 %v8346_v2, %v8345_v9  ;;  %v8354_v7 = vand.u32 4294901760, %v6622_v61  ;;  %v4910_v2 = vpack.c.bf16 %v584_v33, %v577_v1  ;;  %v591_v9 = vand.u32 4294901760, %v590_v22 }
  0xd3   : > { %8344 = vst [vmem:[#allocation63_spill] sm:$0xff] %v6763_v34  ;;  %8350 = vst [vmem:[#allocation65_spill] sm:$0xff] %v6775_v32  ;;  %v6781_v4 = vpack.c.bf16 %v8352_v10, %v8351_v25  ;;  %v5054_v35 = vpack.c.bf16 %v1274_v15, %v1267_v57  ;;  %v598_v43 = vand.u32 4294901760, %v597_v6  ;;  %v1281_v32 = vand.u32 4294901760, %v1280_v46  ;;  %v8378_v14 = vld [vmem:[#allocation56_spill] sm:$0xff] }
  0xd4   : > { %8347 = vst [vmem:[#allocation64_spill] sm:$0xff] %v6769_v28  ;;  %v6787_v34 = vpack.c.bf16 %v8354_v7, %v8353_v44  ;;  %v6789_v28 = vpack.c.bf16 %v596_v3, %v589_v0  ;;  %4911 = vmatpush3.bf16.msra.mxu0 %v4910_v2  ;;  %v4916_v57 = vpack.c.bf16 %v6090_v20, %v6083_v17  ;;  %v8379_v58 = vld [vmem:[#allocation57_spill] sm:$0xff] }
  0xd5   : > { %5055 = vmatpush3.bf16.msra.mxu1 %v5054_v35  ;;  %v4913_v25 = vpack.c.bf16 %v598_v43, %v591_v9  ;;  %v5057_v10 = vpack.c.bf16 %v1288_v50, %v1281_v32  ;;  %4912 = vmatprep.subr.bf16.mxu0 %v8277_v16  ;;  %v5060_v0 = vpack.c.bf16 %v6115_v24, %v6113_v23  ;;  %v8380_v49 = vld [vmem:[#allocation58_spill] sm:$0xff]  ;;  %v8390_v32 = vld [vmem:[#allocation19_spill] sm:$0xff]  ;;  %v8394_v9 = vmov 0 }
  0xd6   : > { %5056 = vmatprep.subr.bf16.mxu1 %v8277_v16  ;;  %v4919_v3 = vpack.c.bf16 %v6166_v36, %v6142_v31  ;;  %v4922_v17 = vpack.c.bf16 %v6278_v60, %v6263_v55  ;;  %v5066_v20 = vpack.c.bf16 %v6348_v45, %v6287_v62  ;;  %v4925_v23 = vpack.c.bf16 %v6352_v54, %v6350_v48  ;;  %v8397_v35 = vld [vmem:[#allocation22_spill] sm:$0xff]  ;;  %v8398_v43 = vld [vmem:[#allocation23_spill] sm:$0xff] }
  0xd7   : > { %v5069_v24 = vpack.c.bf16 %v6421_v41, %v6369_v63  ;;  %v4928_v31 = vpack.c.bf16 %v6454_v12, %v6423_v40  ;;  %v5072_v36 = vpack.c.bf16 %v6456_v47, %v6432_v18  ;;  %v4931_v52 = vpack.c.bf16 %v6477_v59, %v6458_v39  ;;  %v8365_v63 = vld [vmem:[#allocation41_spill] sm:$0xff]  ;;  %v8381_v1 = vld [vmem:[#allocation59_spill] sm:$0xff]  ;;  %v8382_v33 = vld [vmem:[#allocation60_spill] sm:$0xff] }
  0xd8   : > { %4914 = vmatpush3.bf16.msra.mxu0 %v4913_v25  ;;  %v5075_v53 = vpack.c.bf16 %v6491_v51, %v6489_v56  ;;  %v4934_v47 = vpack.c.bf16 %v6574_v26, %v6550_v21  ;;  %v5078_v55 = vpack.c.bf16 %v6622_v61, %v6612_v38  ;;  %v4937_v39 = vpack.c.bf16 %v6674_v37, %v6628_v5  ;;  %v8366_v26 = vld [vmem:[#allocation42_spill] sm:$0xff]  ;;  %v8368_v51 = vld [vmem:[#allocation43_spill] sm:$0xff]  ;;  %v8371_v37 = vld [vmem:[#allocation48_spill] sm:$0xff] }
  0xd9   : > { %5058 = vmatpush3.bf16.msra.mxu1 %v5057_v10  ;;  %4915 = vmatprep.subr.bf16.mxu0 %v8277_v16  ;;  %v5081_v56 = vpack.c.bf16 %v6678_v27, %v6676_v8  ;;  %v8355_v21 = vmov 1.0|1.0   ;;  %vm8367_vm14 = vnez %v8366_v26  ;;  %vm8369_vm10 = vnez %v8368_v51  ;;  %v8375_v5 = vld [vmem:[#allocation52_spill] sm:$0xff]  ;;  %v8376_v27 = vld [vmem:[#allocation54_spill] sm:$0xff]  ;;  %v8377_v8 = vld [vmem:[#allocation55_spill] sm:$0xff] }
  0xda   : > { %5059 = vmatprep.subr.bf16.mxu1 %v8277_v16  ;;  %v8383_v22 = vld [vmem:[#allocation61_spill] sm:$0xff]  ;;  %v8384_v6 = vld [vmem:[#allocation62_spill] sm:$0xff]  ;;  %v8385_v46 = vld [vmem:[#allocation63_spill] sm:$0xff]  ;;  %v8407_v62 = vmov 0  ;;  %v8412_v45 = vmov 0 }
  0xdb   : > { %4095 = vmatmul.mubr.f32.vlgmr.msra.gmra.mrb[0].mxu0 %v6530_v19  ;;  %v8386_v11 = vld [vmem:[#allocation64_spill] sm:$0xff]  ;;  %v8387_v50 = vld [vmem:[#allocation65_spill] sm:$0xff]  ;;  %v8410_v18 = vld [vmem:[#allocation30_spill] sm:$0xff] }
  0xdc   : > { %4305 = vmatmul.mubr.f32.vlgmr.msra.gmra.mrb[0].mxu1 %v6530_v19  ;;  %4917 = vmatpush3.bf16.msra.mxu0 %v4916_v57  ;;  %v8411_v40 = vld [vmem:[#allocation31_spill] sm:$0xff]  ;;  %v8415_v51 = vld [vmem:[#allocation36_spill] sm:$0xff] }
  0xdd   : > { %5061 = vmatpush3.bf16.msra.mxu1 %v5060_v0  ;;  %4918 = vmatprep.subr.bf16.mxu0 %v8277_v16 }
  0xde   : > { %5062 = vmatprep.subr.bf16.mxu1 %v8277_v16  ;;  %4129 = vmatprep.mubr.msk.f32.mxu0 %vm8303_vm1, %v8270_v13 }
  0xdf   : > { %4339 = vmatprep.mubr.msk.f32.mxu1 %vm8303_vm1, %v8270_v13 }
  0xe0   : > { %4920 = vmatpush3.bf16.msra.mxu0 %v4919_v3 }
  0xe1   : > { %5064 = vmatpush3.bf16.msra.mxu1 %v5063_v42  ;;  %4921 = vmatprep.subr.bf16.mxu0 %v8277_v16 }
  0xe2   : > { %5065 = vmatprep.subr.bf16.mxu1 %v8277_v16 }
  0xe4   : > { %4923 = vmatpush3.bf16.msra.mxu0 %v4922_v17  ;;  %v8399_v17 = vmov 0 }
  0xe5   : > { %5067 = vmatpush3.bf16.msra.mxu1 %v5066_v20  ;;  %4924 = vmatprep.subr.bf16.mxu0 %v8277_v16 }
  0xe6   : > { %5068 = vmatprep.subr.bf16.mxu1 %v8277_v16 }
  0xe8   : > { %4926 = vmatpush3.bf16.msra.mxu0 %v4925_v23 }
  0xe9   : > { %5070 = vmatpush3.bf16.msra.mxu1 %v5069_v24  ;;  %4927 = vmatprep.subr.bf16.mxu0 %v8277_v16 }
  0xea   : > { %5071 = vmatprep.subr.bf16.mxu1 %v8277_v16 }
  0xec   : > { %4929 = vmatpush3.bf16.msra.mxu0 %v4928_v31  ;;  %v8402_v31 = vmov 0 }
  0xed   : > { %5073 = vmatpush3.bf16.msra.mxu1 %v5072_v36  ;;  %4930 = vmatprep.subr.bf16.mxu0 %v8277_v16  ;;  %v8405_v36 = vld [vmem:[#allocation27_spill] sm:$0xff] }
  0xee   : > { %5074 = vmatprep.subr.bf16.mxu1 %v8277_v16 }
  0xf0   : > { %4932 = vmatpush3.bf16.msra.mxu0 %v4931_v52  ;;  %v8406_v52 = vld [vmem:[#allocation28_spill] sm:$0xff] }
  0xf1   : > { %5076 = vmatpush3.bf16.msra.mxu1 %v5075_v53  ;;  %4933 = vmatprep.subr.bf16.mxu0 %v8277_v16 }
  0xf2   : > { %5077 = vmatprep.subr.bf16.mxu1 %v8277_v16 }
  0xf4   : > { %4935 = vmatpush3.bf16.msra.mxu0 %v4934_v47 }
  0xf5   : > { %5079 = vmatpush3.bf16.msra.mxu1 %v5078_v55  ;;  %4936 = vmatprep.subr.bf16.mxu0 %v8277_v16 }
  0xf6   : > { %5080 = vmatprep.subr.bf16.mxu1 %v8277_v16 }
  0xf8   : > { %4938 = vmatpush3.bf16.msra.mxu0 %v4937_v39 }
  0xf9   : > { %5082 = vmatpush3.bf16.msra.mxu1 %v5081_v56  ;;  %4939 = vmatprep.subr.bf16.mxu0 %v8277_v16 }
  0xfa   : > { %5083 = vmatprep.subr.bf16.mxu1 %v8277_v16 }
  0xfb   : > { %4130 = vmatmul.mubr.f32.vlgmr.msra.gmra.mrb[0].mxu0 %v6547_v30 }
  0xfc   : > { %4340 = vmatmul.mubr.f32.vlgmr.msra.gmra.mrb[0].mxu1 %v6547_v30  ;;  %4941 = vmatpush3.bf16.msk.msra.mxu0 %vm6051_vm4, %v8355_v21 }
  0xfd   : > { %5085 = vmatpush3.bf16.msk.msra.mxu1 %vm6075_vm9, %v8355_v21  ;;  %4942 = vmatprep.subr.bf16.mxu0 %v8277_v16 }
  0xfe   : > { %5086 = vmatprep.subr.bf16.mxu1 %v8277_v16  ;;  %4164 = vmatprep.mubr.msk.f32.mxu0 %vm8303_vm1, %v8270_v13 }
  0xff   : > { %4374 = vmatprep.mubr.msk.f32.mxu1 %vm8303_vm1, %v8270_v13 }
 0x100   : > { %4944 = vmatpush3.bf16.msk.msra.mxu0 %vm6071_vm8, %v8355_v21 }
 0x101   : > { %5088 = vmatpush3.bf16.msk.msra.mxu1 %vm6109_vm12, %v8355_v21  ;;  %4945 = vmatprep.subr.bf16.mxu0 %v8277_v16 }
 0x102   : > { %5089 = vmatprep.subr.bf16.mxu1 %v8277_v16 }
 0x104   : > { %4947 = vmatpush3.bf16.msk.msra.mxu0 %vm6150_vm15, %v8355_v21 }
 0x105   : > { %5091 = vmatpush3.bf16.msk.msra.mxu1 %vm6184_vm5, %v8355_v21  ;;  %4948 = vmatprep.subr.bf16.mxu0 %v8277_v16 }
 0x106   : > { %5092 = vmatprep.subr.bf16.mxu1 %v8277_v16 }
 0x108   : > { %4950 = vmatpush3.bf16.msk.msra.mxu0 %vm6208_vm7, %v8355_v21 }
 0x109   : > { %5094 = vmatpush3.bf16.msk.msra.mxu1 %vm6246_vm13, %v8355_v21  ;;  %4951 = vmatprep.subr.bf16.mxu0 %v8277_v16 }
 0x10a   : > { %5095 = vmatprep.subr.bf16.mxu1 %v8277_v16 }
 0x10c   : > { %4953 = vmatpush3.bf16.msk.msra.mxu0 %vm6307_vm2, %v8355_v21 }
 0x10d   : > { %5097 = vmatpush3.bf16.msk.msra.mxu1 %vm6332_vm6, %v8355_v21  ;;  %4954 = vmatprep.subr.bf16.mxu0 %v8277_v16  ;;  %vm8372_vm6 = vnez %v8371_v37 }
 0x10e   : > { %5098 = vmatprep.subr.bf16.mxu1 %v8277_v16 }
 0x110   : > { %4956 = vmatpush3.bf16.msk.msra.mxu0 %vm8367_vm14, %v8355_v21 }
 0x111   : > { %5100 = vmatpush3.bf16.msk.msra.mxu1 %vm8369_vm10, %v8355_v21  ;;  %4957 = vmatprep.subr.bf16.mxu0 %v8277_v16 }
 0x112   : > { %5101 = vmatprep.subr.bf16.mxu1 %v8277_v16 }
 0x114   : > { %4959 = vmatpush3.bf16.msk.msra.mxu0 %vm6448_vm3, %v8355_v21 }
 0x115   : > { %5103 = vmatpush3.bf16.msk.msra.mxu1 %vm8372_vm6, %v8355_v21  ;;  %4960 = vmatprep.subr.bf16.mxu0 %v8277_v16 }
 0x116   : > { %5104 = vmatprep.subr.bf16.mxu1 %v8277_v16 }
 0x118   : > { %4962 = vmatpush3.bf16.msk.msra.mxu0 %vm6505_vm0, %v8355_v21 }
 0x119   : > { %5106 = vmatpush3.bf16.msk.msra.mxu1 %vm6526_vm11, %v8355_v21  ;;  %4963 = vmatprep.subr.bf16.mxu0 %v8277_v16 }
 0x11a   : > { %5107 = vmatprep.subr.bf16.mxu1 %v8277_v16 }
 0x11b   : > { %4165 = vmatmul.mubr.f32.vlgmr.msra.gmra.mrb[0].mxu0 %v8375_v5 }
 0x11c   : > { %4375 = vmatmul.mubr.f32.vlgmr.msra.gmra.mrb[0].mxu1 %v8375_v5  ;;  %4965 = vmatpush3.bf16.msra.mxu0 %v8376_v27 }
 0x11d   : > { %5109 = vmatpush3.bf16.msra.mxu1 %v8377_v8  ;;  %4966 = vmatprep.subr.bf16.mxu0 %v8277_v16  ;;  %v8416_v8 = vmov 0 }
 0x11e   : > { %5110 = vmatprep.subr.bf16.mxu1 %v8277_v16  ;;  %4199 = vmatprep.mubr.msk.f32.mxu0 %vm8303_vm1, %v8270_v13 }
 0x11f   : > { %4409 = vmatprep.mubr.msk.f32.mxu1 %vm8303_vm1, %v8270_v13 }
 0x120   : > { %4968 = vmatpush3.bf16.msra.mxu0 %v8378_v14 }
 0x121   : > { %5112 = vmatpush3.bf16.msra.mxu1 %v8379_v58  ;;  %4969 = vmatprep.subr.bf16.mxu0 %v8277_v16  ;;  %v8419_v58 = vld [vmem:[#allocation37_spill] sm:$0xff] }
 0x122   : > { %5113 = vmatprep.subr.bf16.mxu1 %v8277_v16 }
 0x124   : > { %4971 = vmatpush3.bf16.msra.mxu0 %v8380_v49 }
 0x125   : > { %5115 = vmatpush3.bf16.msra.mxu1 %v8381_v1  ;;  %4972 = vmatprep.subr.bf16.mxu0 %v8277_v16  ;;  %v8420_v1 = vmov 0 }
 0x126   : > { %5116 = vmatprep.subr.bf16.mxu1 %v8277_v16 }
 0x128   : > { %4974 = vmatpush3.bf16.msra.mxu0 %v8382_v33 }
 0x129   : > { %5118 = vmatpush3.bf16.msra.mxu1 %v8383_v22  ;;  %4975 = vmatprep.subr.bf16.mxu0 %v8277_v16 }
 0x12a   : > { %5119 = vmatprep.subr.bf16.mxu1 %v8277_v16 }
 0x12c   : > { %4977 = vmatpush3.bf16.msra.mxu0 %v8384_v6 }
 0x12d   : > { %5121 = vmatpush3.bf16.msra.mxu1 %v8385_v46  ;;  %4978 = vmatprep.subr.bf16.mxu0 %v8277_v16 }
 0x12e   : > { %5122 = vmatprep.subr.bf16.mxu1 %v8277_v16 }
 0x130   : > { %4980 = vmatpush3.bf16.msra.mxu0 %v8386_v11  ;;  %v8423_v11 = vld [vmem:[#allocation38_spill] sm:$0xff] }
 0x131   : > { %5124 = vmatpush3.bf16.msra.mxu1 %v8387_v50  ;;  %4981 = vmatprep.subr.bf16.mxu0 %v8277_v16 }
 0x132   : > { %5125 = vmatprep.subr.bf16.mxu1 %v8277_v16 }
 0x134   : > { %4983 = vmatpush3.bf16.msra.mxu0 %v6781_v4  ;;  %v8391_v4 = vld [vmem:[#allocation20_spill] sm:$0xff] }
 0x135   : > { %5127 = vmatpush3.bf16.msra.mxu1 %v6787_v34  ;;  %4984 = vmatprep.subr.bf16.mxu0 %v8277_v16 }
 0x136   : > { %5128 = vmatprep.subr.bf16.mxu1 %v8277_v16 }
 0x138   : > { %4986 = vmatpush3.bf16.msra.mxu0 %v6789_v28 }
 0x139   : > { %5130 = vmatpush3.bf16.msra.mxu1 %v6791_v29  ;;  %4987 = vmatprep.subr.bf16.mxu0 %v8277_v16  ;;  %v8389_v29 = vld [vmem:[#allocation21_spill] sm:$0xff] }
 0x13a   : > { %5131 = vmatprep.subr.bf16.mxu1 %v8277_v16  ;;  %v7016_v15 = vadd.s32 2, %v8389_v29  ;;  %v7019_v28 = vadd.s32 3, %v8389_v29 }
 0x13b   : > { %4200 = vmatmul.mubr.f32.vlgmr.msra.gmra.mrb[0].mxu0 %v6530_v19 }
 0x13c   : > { %4410 = vmatmul.mubr.f32.vlgmr.msra.gmra.mrb[0].mxu1 %v6530_v19  ;;  %4989 = vmatpush3.bf16.msk.msra.mxu0 %vm6051_vm4, %v8355_v21  ;;  %vm8388_vm4 = vnez %v8365_v63 }
 0x13d   : > { %5133 = vmatpush3.bf16.msk.msra.mxu1 %vm6075_vm9, %v8355_v21  ;;  %4990 = vmatprep.subr.bf16.mxu0 %v8277_v16  ;;  %vm1730_vm9 = vcmp.eq.s32.totalorder %v8391_v4, %v7016_v15 }
 0x13e   : > { %5134 = vmatprep.subr.bf16.mxu1 %v8277_v16  ;;  %4234 = vmatprep.mubr.msk.f32.mxu0 %vm8303_vm1, %v8270_v13  ;;  %v3486_v7 = vsel %vm1730_vm9, 1.0, %v8270_v13 }
 0x13f   : > { %4444 = vmatprep.mubr.msk.f32.mxu1 %vm8303_vm1, %v8270_v13  ;;  %v7073_v0 = vsub.f32 %v3486_v7, %v3486_v7 }
 0x140   : > { %4992 = vmatpush3.bf16.msk.msra.mxu0 %vm6071_vm8, %v8355_v21  ;;  %vm1729_vm8 = vcmp.eq.s32.totalorder %v8390_v32, %v7016_v15 }
 0x141   : > { %5136 = vmatpush3.bf16.msk.msra.mxu1 %vm6109_vm12, %v8355_v21  ;;  %4993 = vmatprep.subr.bf16.mxu0 %v8277_v16  ;;  %vm2419_vm12 = vcmp.eq.s32.totalorder %v8390_v32, %v7019_v28  ;;  %v3485_v34 = vsel %vm1729_vm8, 1.0, %v8270_v13  ;;  %v8424_v32 = vld [vmem:[#allocation40_spill] sm:$0xff] }
 0x142   : > { %5137 = vmatprep.subr.bf16.mxu1 %v8277_v16  ;;  %v3549_v2 = vsel %vm2419_vm12, 1.0, %v8270_v13  ;;  %v7066_v10 = vsub.f32 %v3485_v34, %v3485_v34  ;;  %v8425_v34 = vmov 0 }
 0x143   : > { %v7078_v3 = vsub.f32 %v3549_v2, %v3549_v2 }
 0x144   : > { %4995 = vmatpush3.bf16.msk.msra.mxu0 %vm6150_vm15, %v8355_v21  ;;  %vm2420_vm15 = vcmp.eq.s32.totalorder %v8391_v4, %v7019_v28 }
 0x145   : > { %5139 = vmatpush3.bf16.msk.msra.mxu1 %vm6184_vm5, %v8355_v21  ;;  %4996 = vmatprep.subr.bf16.mxu0 %v8277_v16  ;;  %vm7044_vm5 = vmpackc.low %vm1730_vm9, %vm1729_vm8  ;;  %v3550_v25 = vsel %vm2420_vm15, 1.0, %v8270_v13  ;;  %vm2424_vm8 = vcmp.eq.s32.totalorder %v8406_v52, %v7019_v28 }
 0x146   : > { %5140 = vmatprep.subr.bf16.mxu1 %v8277_v16  ;;  %v7089_v23 = vsub.f32 %v3550_v25, %v3550_v25  ;;  %v3554_v41 = vsel %vm2424_vm8, 1.0, %v8270_v13 }
 0x147   : > { %v7201_v27 = vsub.f32 %v3554_v41, %v3554_v41 }
 0x148   : > { %4998 = vmatpush3.bf16.msk.msra.mxu0 %vm6208_vm7, %v8355_v21  ;;  %vm7052_vm7 = vmpackc.low %vm2420_vm15, %vm2419_vm12  ;;  %vm1735_vm12 = vcmp.eq.s32.totalorder %v8410_v18, %v7016_v15  ;;  %vm1736_vm15 = vcmp.eq.s32.totalorder %v8411_v40, %v7016_v15 }
 0x149   : > { %5142 = vmatpush3.bf16.msk.msra.mxu1 %vm6246_vm13, %v8355_v21  ;;  %4999 = vmatprep.subr.bf16.mxu0 %v8277_v16  ;;  %v8395_v9 = vsel %vm7052_vm7, 4294967295, %v8394_v9  ;;  %vm1732_vm13 = vcmp.eq.s32.totalorder %v8398_v43, %v7016_v15  ;;  %v3491_v48 = vsel %vm1735_vm12, 1.0, %v8270_v13  ;;  %v3492_v54 = vsel %vm1736_vm15, 1.0, %v8270_v13 }
 0x14a   : > { %5143 = vmatprep.subr.bf16.mxu1 %v8277_v16  ;;  %8396 = vst [vmem:[#allocation24_spill] sm:$0xff] %v8395_v9  ;;  %v3488_v42 = vsel %vm1732_vm13, 1.0, %v8270_v13  ;;  %v7213_v14 = vsub.f32 %v3491_v48, %v3491_v48  ;;  %v7218_v49 = vsub.f32 %v3492_v54, %v3492_v54 }
 0x14b   : > { %v7121_v47 = vsub.f32 %v3488_v42, %v3488_v42  ;;  %v8139_v42 = vand.u32 4294901760, %v7078_v3 }
 0x14c   : > { %5001 = vmatpush3.bf16.msk.msra.mxu0 %vm6307_vm2, %v8355_v21  ;;  %vm2421_vm2 = vcmp.eq.s32.totalorder %v8397_v35, %v7019_v28 }
 0x14d   : > { %5145 = vmatpush3.bf16.msk.msra.mxu1 %vm8388_vm4, %v8355_v21  ;;  %5002 = vmatprep.subr.bf16.mxu0 %v8277_v16  ;;  %v3551_v20 = vsel %vm2421_vm2, 1.0, %v8270_v13  ;;  %vm2423_vm4 = vcmp.eq.s32.totalorder %v8405_v36, %v7019_v28  ;;  %v8455_v5 = vand.u32 4294901760, %v7121_v47 }
 0x14e   : > { %5146 = vmatprep.subr.bf16.mxu1 %v8277_v16  ;;  %v7123_v55 = vsub.f32 %v3551_v20, %v3551_v20  ;;  %v3553_v12 = vsel %vm2423_vm4, 1.0, %v8270_v13  ;;  %v8132_v20 = vand.u32 4294901760, %v7089_v23 }
 0x14f   : > { %v7189_v38 = vsub.f32 %v3553_v12, %v3553_v12  ;;  %v8431_v12 = vld [vmem:[#allocation44_spill] sm:$0xff] }
 0x150   : > { %5004 = vmatpush3.bf16.msk.msra.mxu0 %vm8367_vm14, %v8355_v21  ;;  %vm1733_vm14 = vcmp.eq.s32.totalorder %v8405_v36, %v7016_v15 }
 0x151   : > { %5148 = vmatpush3.bf16.msk.msra.mxu1 %vm8369_vm10, %v8355_v21  ;;  %5005 = vmatprep.subr.bf16.mxu0 %v8277_v16  ;;  %vm1734_vm10 = vcmp.eq.s32.totalorder %v8406_v52, %v7016_v15  ;;  %v3489_v39 = vsel %vm1733_vm14, 1.0, %v8270_v13 }
 0x152   : > { %5149 = vmatprep.subr.bf16.mxu1 %v8277_v16  ;;  %v3490_v56 = vsel %vm1734_vm10, 1.0, %v8270_v13  ;;  %vm7135_vm9 = vmpackc.low %vm1734_vm10, %vm1733_vm14  ;;  %v7185_v59 = vsub.f32 %v3489_v39, %v3489_v39  ;;  %vm1738_vm10 = vcmp.eq.s32.totalorder %v8419_v58, %v7016_v15 }
 0x153   : > { %v8408_v62 = vsel %vm7135_vm9, 4294967295, %v8407_v62  ;;  %v7187_v37 = vsub.f32 %v3490_v56, %v3490_v56  ;;  %vm7209_vm14 = vmpackc.low %vm1736_vm15, %vm1735_vm12  ;;  %v3494_v6 = vsel %vm1738_vm10, 1.0, %v8270_v13  ;;  %vm2428_vm12 = vcmp.eq.s32.totalorder %v8419_v58, %v7019_v28 }
 0x154   : > { %5007 = vmatpush3.bf16.msk.msra.mxu0 %vm6448_vm3, %v8355_v21  ;;  %vm2422_vm3 = vcmp.eq.s32.totalorder %v8398_v43, %v7019_v28  ;;  %8409 = vst [vmem:[#allocation29_spill] sm:$0xff] %v8408_v62  ;;  %v8417_v8 = vsel %vm7209_vm14, 4294967295, %v8416_v8  ;;  %vm8126_vm15 = vcmp.eq.s32.totalorder %v8423_v11, %v7016_v15  ;;  %v3558_v29 = vsel %vm2428_vm12, 1.0, %v8270_v13 }
 0x155   : > { %5151 = vmatpush3.bf16.msk.msra.mxu1 %vm8372_vm6, %v8355_v21  ;;  %5008 = vmatprep.subr.bf16.mxu0 %v8277_v16  ;;  %v3552_v24 = vsel %vm2422_vm3, 1.0, %v8270_v13  ;;  %8418 = vst [vmem:[#allocation33_spill] sm:$0xff] %v8417_v8  ;;  %v3495_v4 = vsel %vm8126_vm15, 1.0, %v8270_v13  ;;  %v7277_v7 = vsub.f32 %v3494_v6, %v3494_v6  ;;  %vm8127_vm15 = vcmp.eq.s32.totalorder %v8423_v11, %v7019_v28 }
 0x156   : > { %5152 = vmatprep.subr.bf16.mxu1 %v8277_v16  ;;  %v7133_v60 = vsub.f32 %v3552_v24, %v3552_v24  ;;  %v8428_v43 = vmov 0  ;;  %v3559_v25 = vsel %vm8127_vm15, 1.0, %v8270_v13  ;;  %v7307_v36 = vsub.f32 %v3558_v29, %v3558_v29 }
 0x157   : > { %v7309_v52 = vsub.f32 %v3495_v4, %v3495_v4  ;;  %vm8433_vm15 = vcmp.eq.s32.totalorder %v8423_v11, %v7016_v15  ;;  %v7336_v41 = vsub.f32 %v3559_v25, %v3559_v25  ;;  %v2569_v58 = vsub.f32 %v7089_v23, %v8132_v20  ;;  %v8442_v4 = vld [vmem:[#allocation46_spill] sm:$0xff]  ;;  %v8449_v20 = vld [vmem:[#allocation49_spill] sm:$0xff] }
 0x158   : > { %5010 = vmatpush3.bf16.msk.msra.mxu0 %vm6505_vm0, %v8355_v21  ;;  %vm1731_vm0 = vcmp.eq.s32.totalorder %v8397_v35, %v7016_v15  ;;  %v8141_v35 = vand.u32 4294901760, %v7066_v10  ;;  %v8445_v25 = vmov 0 }
 0x159   : > { %5154 = vmatpush3.bf16.msk.msra.mxu1 %vm6526_vm11, %v8355_v21  ;;  %5155 = vmatprep.subr.bf16.mxu0 %v8277_v16  ;;  %v3487_v57 = vsel %vm1731_vm0, 1.0, %v8270_v13  ;;  %vm7081_vm6 = vmpackc.low %vm1732_vm13, %vm1731_vm0  ;;  %vm2425_vm13 = vcmp.eq.s32.totalorder %v8410_v18, %v7019_v28  ;;  %v8432_v18 = vld [vmem:[#allocation45_spill] sm:$0xff]  ;;  %v8479_v9 = vand.u32 4294901760, %v7309_v52 }
 0x15a   : > { %5299 = vmatprep.subr.bf16.mxu1 %v8277_v16  ;;  %v8400_v17 = vsel %vm7081_vm6, 4294967295, %v8399_v17  ;;  %vm7103_vm11 = vmpackc.low %vm2422_vm3, %vm2421_vm2  ;;  %v7111_v53 = vsub.f32 %v3487_v57, %v3487_v57  ;;  %vm2426_vm2 = vcmp.eq.s32.totalorder %v8411_v40, %v7019_v28  ;;  %v3555_v63 = vsel %vm2425_vm13, 1.0, %v8270_v13 }
 0x15b   : > { %4235 = vmatmul.mubr.f32.vlgmr.msra.gmra.mrb[0].mxu0 %v6530_v19  ;;  %8401 = vst [vmem:[#allocation26_spill] sm:$0xff] %v8400_v17  ;;  %v8403_v31 = vsel %vm7103_vm11, 4294967295, %v8402_v31  ;;  %vm7159_vm0 = vmpackc.low %vm2424_vm8, %vm2423_vm4  ;;  %v3556_v26 = vsel %vm2426_vm2, 1.0, %v8270_v13  ;;  %vm1737_vm3 = vcmp.eq.s32.totalorder %v8415_v51, %v7016_v15  ;;  %v7231_v33 = vsub.f32 %v3555_v63, %v3555_v63 }
 0x15c   : > { %4445 = vmatmul.mubr.f32.vlgmr.msra.gmra.mrb[0].mxu1 %v6530_v19  ;;  %5157 = vmatpush3.bf16.msk.msra.mxu0 %vm7044_vm5, %v8355_v21  ;;  %8404 = vst [vmem:[#allocation25_spill] sm:$0xff] %v8403_v31  ;;  %v8413_v45 = vsel %vm7159_vm0, 4294967295, %v8412_v45  ;;  %v3493_v61 = vsel %vm1737_vm3, 1.0, %v8270_v13  ;;  %vm7227_vm4 = vmpackc.low %vm2426_vm2, %vm2425_vm13  ;;  %v7233_v22 = vsub.f32 %v3556_v26, %v3556_v26  ;;  %vm2427_vm8 = vcmp.eq.s32.totalorder %v8415_v51, %v7019_v28 }
 0x15d   : > { %5301 = vmatpush3.bf16.msk.msra.mxu1 %vm7052_vm7, %v8355_v21  ;;  %5158 = vmatprep.subr.bf16.mxu0 %v8277_v16  ;;  %8414 = vst [vmem:[#allocation32_spill] sm:$0xff] %v8413_v45  ;;  %v8421_v1 = vsel %vm7227_vm4, 4294967295, %v8420_v1  ;;  %v7239_v46 = vsub.f32 %v3493_v61, %v3493_v61  ;;  %v3557_v50 = vsel %vm2427_vm8, 1.0, %v8270_v13  ;;  %vm1740_vm13 = vcmp.eq.s32.totalorder %v8424_v32, %v7016_v15  ;;  %vm7273_vm2 = vmpackc.low %vm1738_vm10, %vm1737_vm3 }
 0x15e   : > { %5302 = vmatprep.subr.bf16.mxu1 %v8277_v16  ;;  %4479 = vmatprep.mubr.msk.f32.mxu0 %vm8303_vm1, %v8270_v13  ;;  %8422 = vst [vmem:[#allocation34_spill] sm:$0xff] %v8421_v1  ;;  %v8426_v34 = vsel %vm7273_vm2, 4294967295, %v8425_v34  ;;  %v3496_v2 = vsel %vm1740_vm13, 1.0, %v8270_v13  ;;  %vm7294_vm3 = vmpackc.low %vm2428_vm12, %vm2427_vm8  ;;  %v8140_v57 = vand.u32 4294901760, %v7073_v0  ;;  %v7305_v24 = vsub.f32 %v3557_v50, %v3557_v50 }
 0x15f   : > { %4689 = vmatprep.mubr.msk.f32.mxu1 %vm8303_vm1, %v8270_v13  ;;  %8427 = vst [vmem:[#allocation35_spill] sm:$0xff] %v8426_v34  ;;  %v8429_v43 = vsel %vm7294_vm3, 4294967295, %v8428_v43  ;;  %vm2430_vm10 = vcmp.eq.s32.totalorder %v8424_v32, %v7019_v28  ;;  %v7313_v39 = vsub.f32 %v3496_v2, %v3496_v2  ;;  %vm8130_vm8 = vcmp.eq.s32.totalorder %v8431_v12, %v7016_v15 }
 0x160   : > { %5160 = vmatpush3.bf16.msk.msra.mxu0 %vm7081_vm6, %v8355_v21  ;;  %8430 = vst [vmem:[#allocation39_spill] sm:$0xff] %v8429_v43  ;;  %v3560_v56 = vsel %vm2430_vm10, 1.0, %v8270_v13  ;;  %v8434_v40 = vmov 0  ;;  %v3497_v48 = vsel %vm8130_vm8, 1.0, %v8270_v13  ;;  %vm8131_vm12 = vcmp.eq.s32.totalorder %v8431_v12, %v7019_v28 }
 0x161   : > { %5304 = vmatpush3.bf16.msk.msra.mxu1 %vm7103_vm11, %v8355_v21  ;;  %5161 = vmatprep.subr.bf16.mxu0 %v8277_v16  ;;  %v1872_v54 = vsub.f32 %v7066_v10, %v8141_v35  ;;  %v8438_v63 = vmov 0  ;;  %vm8441_vm8 = vcmp.eq.s32.totalorder %v8432_v18, %v7016_v15  ;;  %v1879_v51 = vsub.f32 %v7073_v0, %v8140_v57 }
 0x162   : > { %5305 = vmatprep.subr.bf16.mxu1 %v8277_v16  ;;  %v3498_v26 = vsel %vm8441_vm8, 1.0, %v8270_v13  ;;  %v2562_v61 = vsub.f32 %v7078_v3, %v8139_v42  ;;  %v8149_v6 = vand.u32 4294901760, %v7111_v53  ;;  %v7374_v29 = vsub.f32 %v3560_v56, %v3560_v56 }
 0x163   : > { %v3561_v32 = vsel %vm8131_vm12, 1.0, %v8270_v13  ;;  %v8452_v42 = vmov 0  ;;  %v1873_v57 = vand.u32 4294901760, %v1872_v54  ;;  %v1880_v35 = vand.u32 4294901760, %v1879_v51 }
 0x164   : > { %5163 = vmatpush3.bf16.msk.msra.mxu0 %vm7135_vm9, %v8355_v21  ;;  %v2563_v2 = vand.u32 4294901760, %v2562_v61  ;;  %v2570_v50 = vand.u32 4294901760, %v2569_v58  ;;  %v7431_v43 = vsub.f32 %v3497_v48, %v3497_v48  ;;  %v8457_v54 = vand.u32 4294901760, %v7133_v60 }
 0x165   : > { %5307 = vmatpush3.bf16.msk.msra.mxu1 %vm7159_vm0, %v8355_v21  ;;  %5164 = vmatprep.subr.bf16.mxu0 %v8277_v16  ;;  %v7446_v48 = vsub.f32 %v3561_v32, %v3561_v32  ;;  %v8464_v58 = vmov 0  ;;  %v8468_v1 = vand.u32 4294901760, %v7187_v37  ;;  %v8469_v45 = vand.u32 4294901760, %v7189_v38 }
 0x166   : > { %5308 = vmatprep.subr.bf16.mxu1 %v8277_v16  ;;  %v2583_v51 = vsub.f32 %v7133_v60, %v8457_v54  ;;  %v5324_v54 = vpack.c.bf16 %v2570_v50, %v2563_v2  ;;  %v8169_v2 = vand.u32 4294901760, %v7277_v7 }
 0x167   : > { %v1907_v8 = vsub.f32 %v7187_v37, %v8468_v1  ;;  %v2590_v62 = vsub.f32 %v7189_v38, %v8469_v45  ;;  %v8471_v1 = vld [vmem:[#allocation53_spill] sm:$0xff] }
 0x168   : > { %5166 = vmatpush3.bf16.msk.msra.mxu0 %vm7209_vm14, %v8355_v21  ;;  %v2584_v34 = vand.u32 4294901760, %v2583_v51 }
 0x169   : > { %5310 = vmatpush3.bf16.msk.msra.mxu1 %vm7227_vm4, %v8355_v21  ;;  %5167 = vmatprep.subr.bf16.mxu0 %v8277_v16  ;;  %vm7332_vm4 = vmpackc.low %vm1740_vm13, %vm8433_vm15  ;;  %vm8437_vm15 = vcmp.eq.s32.totalorder %v8423_v11, %v7019_v28  ;;  %v1886_v11 = vsub.f32 %v7111_v53, %v8149_v6  ;;  %v1908_v45 = vand.u32 4294901760, %v1907_v8  ;;  %v2591_v31 = vand.u32 4294901760, %v2590_v62 }
 0x16a   : > { %5311 = vmatprep.subr.bf16.mxu1 %v8277_v16  ;;  %v8435_v40 = vsel %vm7332_vm4, 4294967295, %v8434_v40  ;;  %vm7352_vm13 = vmpackc.low %vm2430_vm10, %vm8437_vm15  ;;  %vm8443_vm15 = vcmp.eq.s32.totalorder %v8431_v12, %v7016_v15  ;;  %v8476_v62 = vand.u32 4294901760, %v7239_v46 }
 0x16b   : > { %8436 = vst [vmem:[#allocation41_spill] sm:$0xff] %v8435_v40  ;;  %v8439_v63 = vsel %vm7352_vm13, 4294967295, %v8438_v63  ;;  %vm8444_vm10 = vmmov %vm8441_vm8  ;;  %vm8448_vm8 = vcmp.eq.s32.totalorder %v8432_v18, %v7019_v28  ;;  %v1887_v61 = vand.u32 4294901760, %v1886_v11 }
 0x16c   : > { %5169 = vmatpush3.bf16.msk.msra.mxu0 %vm7273_vm2, %v8355_v21  ;;  %8440 = vst [vmem:[#allocation42_spill] sm:$0xff] %v8439_v63  ;;  %vm7395_vm12 = vmpackc.low %vm8444_vm10, %vm8443_vm15  ;;  %v3562_v56 = vsel %vm8448_vm8, 1.0, %v8270_v13  ;;  %vm8450_vm10 = vcmp.eq.s32.totalorder %v8431_v12, %v7019_v28  ;;  %v1893_v63 = vsub.f32 %v7121_v47, %v8455_v5  ;;  %v8456_v12 = vand.u32 4294901760, %v7123_v55 }
 0x16d   : > { %5313 = vmatpush3.bf16.msk.msra.mxu1 %vm7294_vm3, %v8355_v21  ;;  %5170 = vmatprep.subr.bf16.mxu0 %v8277_v16  ;;  %v8446_v25 = vsel %vm7395_vm12, 4294967295, %v8445_v25  ;;  %vm8451_vm15 = vmmov %vm8448_vm8  ;;  %v7441_v5 = vsub.f32 %v3498_v26, %v3498_v26  ;;  %v8460_v26 = vmov 0  ;;  %v7463_v6 = vsub.f32 %v3562_v56, %v3562_v56 }
 0x16e   : > { %5314 = vmatprep.subr.bf16.mxu1 %v8277_v16  ;;  %8447 = vst [vmem:[#allocation43_spill] sm:$0xff] %v8446_v25  ;;  %vm7417_vm8 = vmpackc.low %vm8451_vm15, %vm8450_vm10  ;;  %v2576_v18 = vsub.f32 %v7123_v55, %v8456_v12  ;;  %vm8458_vm10 = vcmp.eq.s32.totalorder %v8442_v4, %v7016_v15  ;;  %v5180_v56 = vpack.c.bf16 %v1880_v35, %v1873_v57  ;;  %v1894_v40 = vand.u32 4294901760, %v1893_v63 }
 0x16f   : > { %v8453_v42 = vsel %vm7417_vm8, 4294967295, %v8452_v42  ;;  %v3499_v12 = vsel %vm8458_vm10, 1.0, %v8270_v13  ;;  %vm8459_vm15 = vmmov %vm8458_vm10  ;;  %vm8463_vm10 = vcmp.eq.s32.totalorder %v8449_v20, %v7019_v28  ;;  %v8470_v35 = vand.u32 4294901760, %v7201_v27 }
 0x170   : > { %5172 = vmatpush3.bf16.msk.msra.mxu0 %vm7332_vm4, %v8355_v21  ;;  %vm1744_vm4 = vcmp.eq.s32.totalorder %v8449_v20, %v7016_v15  ;;  %8454 = vst [vmem:[#allocation47_spill] sm:$0xff] %v8453_v42  ;;  %v2577_v42 = vand.u32 4294901760, %v2576_v18  ;;  %v8467_v15 = vand.u32 4294901760, %v7185_v59  ;;  %v7503_v11 = vsub.f32 %v3499_v12, %v3499_v12 }
 0x171   : > { %5316 = vmatpush3.bf16.msk.msra.mxu1 %vm7352_vm13, %v8355_v21  ;;  %vm2433_vm13 = vcmp.eq.s32.totalorder %v8442_v4, %v7019_v28  ;;  %5173 = vmatprep.subr.bf16.mxu0 %v8277_v16  ;;  %vm7458_vm3 = vmpackc.low %vm1744_vm4, %vm8459_vm15  ;;  %v3500_v32 = vsel %vm1744_vm4, 1.0, %v8270_v13  ;;  %v2597_v57 = vsub.f32 %v7201_v27, %v8470_v35  ;;  %v8168_v63 = vand.u32 4294901760, %v7307_v36 }
 0x172   : > { %5317 = vmatprep.subr.bf16.mxu1 %v8277_v16  ;;  %v8461_v26 = vsel %vm7458_vm3, 4294967295, %v8460_v26  ;;  %vm7477_vm15 = vmpackc.low %vm8463_vm10, %vm2433_vm13  ;;  %v1900_v25 = vsub.f32 %v7185_v59, %v8467_v15  ;;  %v7510_v51 = vsub.f32 %v3500_v32, %v3500_v32  ;;  %v5183_v15 = vpack.c.bf16 %v1894_v40, %v1887_v61 }
 0x173   : > { %8462 = vst [vmem:[#allocation48_spill] sm:$0xff] %v8461_v26  ;;  %v8465_v58 = vsel %vm7477_vm15, 4294967295, %v8464_v58  ;;  %v5327_v12 = vpack.c.bf16 %v2584_v34, %v2577_v42  ;;  %v2598_v18 = vand.u32 4294901760, %v2597_v57  ;;  %v8473_v32 = vand.u32 4294901760, %v7218_v49  ;;  %vm8478_vm4 = vmmov %vm8463_vm10 }
 0x174   : > { %5175 = vmatpush3.bf16.msk.msra.mxu0 %vm7395_vm12, %v8355_v21  ;;  %8466 = vst [vmem:[#allocation50_spill] sm:$0xff] %v8465_v58  ;;  %v1901_v35 = vand.u32 4294901760, %v1900_v25  ;;  %v8472_v58 = vand.u32 4294901760, %v7213_v14  ;;  %v8474_v25 = vand.u32 4294901760, %v7231_v33  ;;  %v1928_v34 = vsub.f32 %v7239_v46, %v8476_v62 }
 0x175   : > { %5319 = vmatpush3.bf16.msk.msra.mxu1 %vm7417_vm8, %v8355_v21  ;;  %5176 = vmatprep.subr.bf16.mxu0 %v8277_v16  ;;  %v1921_v40 = vsub.f32 %v7218_v49, %v8473_v32  ;;  %v1935_v42 = vsub.f32 %v7277_v7, %v8169_v2  ;;  %v2625_v57 = vsub.f32 %v7307_v36, %v8168_v63  ;;  %v3563_v62 = vsel %vm2433_vm13, 1.0, %v8270_v13 }
 0x176   : > { %5320 = vmatprep.subr.bf16.mxu1 %v8277_v16  ;;  %v1914_v50 = vsub.f32 %v7213_v14, %v8472_v58  ;;  %v2604_v61 = vsub.f32 %v7231_v33, %v8474_v25  ;;  %v8477_v58 = vand.u32 4294901760, %v7305_v24  ;;  %v5186_v63 = vpack.c.bf16 %v1908_v45, %v1901_v35 }
 0x177   : > { %v1922_v25 = vand.u32 4294901760, %v1921_v40  ;;  %v1929_v26 = vand.u32 4294901760, %v1928_v34  ;;  %v1936_v4 = vand.u32 4294901760, %v1935_v42  ;;  %v1942_v28 = vsub.f32 %v7309_v52, %v8479_v9 }
 0x178   : > { %5178 = vmatpush3.bf16.msk.msra.mxu0 %vm7458_vm3, %v8355_v21  ;;  %v1915_v2 = vand.u32 4294901760, %v1914_v50  ;;  %v2605_v32 = vand.u32 4294901760, %v2604_v61  ;;  %v2626_v20 = vand.u32 4294901760, %v2625_v57  ;;  %v8480_v45 = vand.u32 4294901760, %v7313_v39 }
 0x179   : > { %5322 = vmatpush3.bf16.msk.msra.mxu1 %vm7477_vm15, %v8355_v21  ;;  %5179 = vmatprep.subr.bf16.mxu0 %v8277_v16  ;;  %v1955_v40 = vand.u32 4294901760, %v7431_v43  ;;  %v2645_v9 = vand.u32 4294901760, %v7446_v48  ;;  %v5192_v57 = vpack.c.bf16 %v1936_v4, %v1929_v26  ;;  %v1976_v26 = vand.u32 4294901760, %v7510_v51 }
 0x17a   : > { %5323 = vmatprep.subr.bf16.mxu1 %v8277_v16  ;;  %v1949_v50 = vsub.f32 %v7313_v39, %v8480_v45  ;;  %v5189_v34 = vpack.c.bf16 %v1922_v25, %v1915_v2 }
 0x17b   : > { %4480 = vmatmul.mubr.f32.vlgmr.msra.gmra.mrb[2].mxu0 %v8471_v1 }
 0x17c   : > { %4690 = vmatmul.mubr.f32.vlgmr.msra.gmra.mrb[2].mxu1 %v8471_v1  ;;  %5181 = vmatpush3.bf16.msra.mxu0 %v5180_v56  ;;  %v8475_v1 = vand.u32 4294901760, %v7233_v22 }
 0x17d   : > { %5325 = vmatpush3.bf16.msra.mxu1 %v5324_v54  ;;  %5182 = vmatprep.subr.bf16.mxu0 %v8277_v16  ;;  %v2618_v54 = vsub.f32 %v7305_v24, %v8477_v58  ;;  %v3564_v58 = vsel %vm8478_vm4, 1.0, %v8270_v13 }
 0x17e   : > { %v2611_v8 = vsub.f32 %v7233_v22, %v8475_v1  ;;  %5326 = vmatprep.subr.bf16.mxu1 %v8277_v16  ;;  %4514 = vmatprep.mubr.msk.f32.mxu0 %vm8303_vm1, %v8270_v13  ;;  %v5330_v1 = vpack.c.bf16 %v2598_v18, %v2591_v31  ;;  %v8481_v31 = vand.u32 4294901760, %v7336_v41 }
 0x17f   : > { %4724 = vmatprep.mubr.msk.f32.mxu1 %vm8303_vm1, %v8270_v13  ;;  %v2619_v17 = vand.u32 4294901760, %v2618_v54  ;;  %v2652_v54 = vand.u32 4294901760, %v7463_v6 }
 0x180   : > { %5184 = vmatpush3.bf16.msra.mxu0 %v5183_v15  ;;  %v2612_v56 = vand.u32 4294901760, %v2611_v8  ;;  %v2632_v18 = vsub.f32 %v7336_v41, %v8481_v31  ;;  %v8482_v15 = vand.u32 4294901760, %v7374_v29  ;;  %v7576_v8 = vsub.f32 %v3564_v58, %v3564_v58 }
 0x181   : > { %5328 = vmatpush3.bf16.msra.mxu1 %v5327_v12  ;;  %5185 = vmatprep.subr.bf16.mxu0 %v8277_v16  ;;  %v7571_v12 = vsub.f32 %v3563_v62, %v3563_v62  ;;  %v1943_v62 = vand.u32 4294901760, %v1942_v28  ;;  %v5336_v45 = vpack.c.bf16 %v2626_v20, %v2619_v17  ;;  %v1950_v31 = vand.u32 4294901760, %v1949_v50 }
 0x182   : > { %5329 = vmatprep.subr.bf16.mxu1 %v8277_v16  ;;  %v2639_v35 = vsub.f32 %v7374_v29, %v8482_v15  ;;  %v5333_v42 = vpack.c.bf16 %v2612_v56, %v2605_v32  ;;  %v2633_v15 = vand.u32 4294901760, %v2632_v18  ;;  %v1956_v58 = vsub.f32 %v7431_v43, %v1955_v40 }
 0x183   : > { %v2646_v56 = vsub.f32 %v7446_v48, %v2645_v9  ;;  %v1969_v32 = vand.u32 4294901760, %v7503_v11  ;;  %v2653_v17 = vsub.f32 %v7463_v6, %v2652_v54  ;;  %v8177_v25 = vand.u32 4294901760, %v7571_v12 }
 0x184   : > { %5187 = vmatpush3.bf16.msra.mxu0 %v5186_v63  ;;  %v2640_v61 = vand.u32 4294901760, %v2639_v35  ;;  %v8483_v63 = vand.u32 4294901760, %v7441_v5  ;;  %v5195_v4 = vpack.c.bf16 %v1950_v31, %v1943_v62  ;;  %v1957_v20 = vand.u32 4294901760, %v1956_v58 }
 0x185   : > { %5331 = vmatpush3.bf16.msra.mxu1 %v5330_v1  ;;  %5188 = vmatprep.subr.bf16.mxu0 %v8277_v16  ;;  %v8176_v1 = vand.u32 4294901760, %v7576_v8  ;;  %v2647_v18 = vand.u32 4294901760, %v2646_v56  ;;  %v1970_v35 = vsub.f32 %v7503_v11, %v1969_v32 }
 0x186   : > { %5332 = vmatprep.subr.bf16.mxu1 %v8277_v16  ;;  %v1963_v2 = vsub.f32 %v7441_v5, %v8483_v63  ;;  %v5339_v28 = vpack.c.bf16 %v2640_v61, %v2633_v15  ;;  %v2660_v63 = vsub.f32 %v7571_v12, %v8177_v25  ;;  %v8507_v25 = vld [vmem:[#allocation52_spill] sm:$0xff] }
 0x187   : > { %v2667_v61 = vsub.f32 %v7576_v8, %v8176_v1 }
 0x188   : > { %5190 = vmatpush3.bf16.msra.mxu0 %v5189_v34  ;;  %v1964_v50 = vand.u32 4294901760, %v1963_v2  ;;  %v2654_v34 = vand.u32 4294901760, %v2653_v17  ;;  %v2661_v15 = vand.u32 4294901760, %v2660_v63  ;;  %v5204_v17 = vpack.c.bf16 %v7073_v0, %v7066_v10 }
 0x189   : > { %5334 = vmatpush3.bf16.msra.mxu1 %v5333_v42  ;;  %5191 = vmatprep.subr.bf16.mxu0 %v8277_v16  ;;  %v1977_v42 = vsub.f32 %v7510_v51, %v1976_v26  ;;  %v2668_v58 = vand.u32 4294901760, %v2667_v61  ;;  %v5360_v63 = vpack.c.bf16 %v7307_v36, %v7305_v24  ;;  %v5219_v61 = vpack.c.bf16 %v7313_v39, %v7309_v52 }
 0x18a   : > { %5335 = vmatprep.subr.bf16.mxu1 %v8277_v16  ;;  %v5198_v62 = vpack.c.bf16 %v1964_v50, %v1957_v20  ;;  %v5351_v20 = vpack.c.bf16 %v7133_v60, %v7123_v55  ;;  %v5210_v50 = vpack.c.bf16 %v7187_v37, %v7185_v59 }
 0x18b   : > { %v1978_v31 = vand.u32 4294901760, %v1977_v42  ;;  %v5345_v56 = vpack.c.bf16 %v2668_v58, %v2661_v15  ;;  %v5216_v42 = vpack.c.bf16 %v7277_v7, %v7239_v46  ;;  %v5369_v15 = vpack.c.bf16 %v7576_v8, %v7571_v12 }
 0x18c   : > { %5193 = vmatpush3.bf16.msra.mxu0 %v5192_v57  ;;  %v1971_v57 = vand.u32 4294901760, %v1970_v35  ;;  %v5213_v35 = vpack.c.bf16 %v7218_v49, %v7213_v14 }
 0x18d   : > { %5337 = vmatpush3.bf16.msra.mxu1 %v5336_v45  ;;  %5194 = vmatprep.subr.bf16.mxu0 %v8277_v16  ;;  %v5342_v45 = vpack.c.bf16 %v2654_v34, %v2647_v18  ;;  %v5354_v18 = vpack.c.bf16 %v7201_v27, %v7189_v38  ;;  %v5357_v34 = vpack.c.bf16 %v7233_v22, %v7231_v33 }
 0x18e   : > { %5338 = vmatprep.subr.bf16.mxu1 %v8277_v16  ;;  %v5201_v2 = vpack.c.bf16 %v1978_v31, %v1971_v57  ;;  %v5222_v57 = vpack.c.bf16 %v7441_v5, %v7431_v43  ;;  %v5225_v31 = vpack.c.bf16 %v7510_v51, %v7503_v11  ;;  %v8529_v43 = vand.u32 4294901760, %v7571_v12 }
 0x190   : > { %5196 = vmatpush3.bf16.msra.mxu0 %v5195_v4  ;;  %v5348_v4 = vpack.c.bf16 %v7089_v23, %v7078_v3 }
 0x191   : > { %5340 = vmatpush3.bf16.msra.mxu1 %v5339_v28  ;;  %5197 = vmatprep.subr.bf16.mxu0 %v8277_v16  ;;  %v5207_v28 = vpack.c.bf16 %v7121_v47, %v7111_v53 }
 0x192   : > { %5341 = vmatprep.subr.bf16.mxu1 %v8277_v16 }
 0x194   : > { %5199 = vmatpush3.bf16.msra.mxu0 %v5198_v62  ;;  %v5363_v62 = vpack.c.bf16 %v7374_v29, %v7336_v41 }
 0x195   : > { %5343 = vmatpush3.bf16.msra.mxu1 %v5342_v45  ;;  %5200 = vmatprep.subr.bf16.mxu0 %v8277_v16  ;;  %v5366_v45 = vpack.c.bf16 %v7463_v6, %v7446_v48  ;;  %v7905_v48 = vld [vmem:[%s283_s21] sm:$0xff] }
 0x196   : > { %5344 = vmatprep.subr.bf16.mxu1 %v8277_v16 }
 0x198   : > { %5202 = vmatpush3.bf16.msra.mxu0 %v5201_v2 }
 0x199   : > { %5346 = vmatpush3.bf16.msra.mxu1 %v5345_v56  ;;  %5203 = vmatprep.subr.bf16.mxu0 %v8277_v16 }
 0x19a   : > { %5347 = vmatprep.subr.bf16.mxu1 %v8277_v16 }
 0x19b   : > { %4515 = vmatmul.mubr.f32.vlgmr.msra.gmra.mrb[2].mxu0 %v6530_v19 }
 0x19c   : > { %4725 = vmatmul.mubr.f32.vlgmr.msra.gmra.mrb[2].mxu1 %v6530_v19  ;;  %5205 = vmatpush3.bf16.msra.mxu0 %v5204_v17 }
 0x19d   : > { %5349 = vmatpush3.bf16.msra.mxu1 %v5348_v4  ;;  %5206 = vmatprep.subr.bf16.mxu0 %v8277_v16 }
 0x19e   : > { %5350 = vmatprep.subr.bf16.mxu1 %v8277_v16  ;;  %4549 = vmatprep.mubr.msk.f32.mxu0 %vm8303_vm1, %v8270_v13 }
 0x19f   : > { %4759 = vmatprep.mubr.msk.f32.mxu1 %vm8303_vm1, %v8270_v13 }
 0x1a0   : > { %5208 = vmatpush3.bf16.msra.mxu0 %v5207_v28  ;;  %v8490_v28 = vld [vmem:[#allocation34_spill] sm:$0xff] }
 0x1a1   : > { %5352 = vmatpush3.bf16.msra.mxu1 %v5351_v20  ;;  %5209 = vmatprep.subr.bf16.mxu0 %v8277_v16  ;;  %vm8491_vm13 = vnez %v8490_v28 }
 0x1a2   : > { %5353 = vmatprep.subr.bf16.mxu1 %v8277_v16 }
 0x1a4   : > { %5211 = vmatpush3.bf16.msra.mxu0 %v5210_v50  ;;  %v8493_v50 = vld [vmem:[#allocation39_spill] sm:$0xff] }
 0x1a5   : > { %5355 = vmatpush3.bf16.msra.mxu1 %v5354_v18  ;;  %5212 = vmatprep.subr.bf16.mxu0 %v8277_v16  ;;  %vm8494_vm10 = vnez %v8493_v50  ;;  %v8495_v18 = vld [vmem:[#allocation41_spill] sm:$0xff] }
 0x1a6   : > { %5356 = vmatprep.subr.bf16.mxu1 %v8277_v16  ;;  %vm8496_vm4 = vnez %v8495_v18 }
 0x1a8   : > { %5214 = vmatpush3.bf16.msra.mxu0 %v5213_v35  ;;  %v8497_v35 = vld [vmem:[#allocation42_spill] sm:$0xff] }
 0x1a9   : > { %5358 = vmatpush3.bf16.msra.mxu1 %v5357_v34  ;;  %5215 = vmatprep.subr.bf16.mxu0 %v8277_v16 }
 0x1aa   : > { %5359 = vmatprep.subr.bf16.mxu1 %v8277_v16 }
 0x1ac   : > { %5217 = vmatpush3.bf16.msra.mxu0 %v5216_v42 }
 0x1ad   : > { %5361 = vmatpush3.bf16.msra.mxu1 %v5360_v63  ;;  %5218 = vmatprep.subr.bf16.mxu0 %v8277_v16 }
 0x1ae   : > { %5362 = vmatprep.subr.bf16.mxu1 %v8277_v16 }
 0x1b0   : > { %5220 = vmatpush3.bf16.msra.mxu0 %v5219_v61 }
 0x1b1   : > { %5364 = vmatpush3.bf16.msra.mxu1 %v5363_v62  ;;  %5221 = vmatprep.subr.bf16.mxu0 %v8277_v16  ;;  %v8503_v62 = vand.u32 4294901760, %v7066_v10  ;;  %v8508_v10 = vand.u32 4294901760, %v7111_v53  ;;  %v8512_v53 = vand.u32 4294901760, %v7185_v59  ;;  %v8518_v59 = vand.u32 4294901760, %v7231_v33 }
 0x1b2   : > { %5365 = vmatprep.subr.bf16.mxu1 %v8277_v16  ;;  %v8524_v33 = vand.u32 4294901760, %v7309_v52  ;;  %v5414_v52 = vpack.c.bf16 %v2652_v54, %v2645_v9 }
 0x1b4   : > { %5223 = vmatpush3.bf16.msra.mxu0 %v5222_v57  ;;  %v8504_v57 = vand.u32 4294901760, %v7073_v0  ;;  %v8509_v0 = vand.u32 4294901760, %v7121_v47  ;;  %v8513_v47 = vand.u32 4294901760, %v7187_v37  ;;  %v8519_v37 = vand.u32 4294901760, %v7233_v22 }
 0x1b5   : > { %5367 = vmatpush3.bf16.msra.mxu1 %v5366_v45  ;;  %5224 = vmatprep.subr.bf16.mxu0 %v8277_v16  ;;  %v8525_v22 = vand.u32 4294901760, %v7313_v39  ;;  %v5273_v39 = vpack.c.bf16 %v1976_v26, %v1969_v32 }
 0x1b6   : > { %5368 = vmatprep.subr.bf16.mxu1 %v8277_v16  ;;  %v5252_v45 = vpack.c.bf16 %v8504_v57, %v8503_v62  ;;  %v5255_v62 = vpack.c.bf16 %v8509_v0, %v8508_v10  ;;  %v5405_v10 = vpack.c.bf16 %v8519_v37, %v8518_v59 }
 0x1b8   : > { %5226 = vmatpush3.bf16.msra.mxu0 %v5225_v31  ;;  %v8505_v31 = vand.u32 4294901760, %v7078_v3  ;;  %v8510_v3 = vand.u32 4294901760, %v7123_v55  ;;  %v5258_v55 = vpack.c.bf16 %v8513_v47, %v8512_v53 }
 0x1b9   : > { %5370 = vmatpush3.bf16.msra.mxu1 %v5369_v15  ;;  %5227 = vmatprep.subr.bf16.mxu0 %v8277_v16  ;;  %v8506_v15 = vand.u32 4294901760, %v7089_v23  ;;  %v8511_v23 = vand.u32 4294901760, %v7133_v60  ;;  %v8514_v60 = vand.u32 4294901760, %v7189_v38  ;;  %v8520_v38 = vand.u32 4294901760, %v7239_v46 }
 0x1ba   : > { %5371 = vmatprep.subr.bf16.mxu1 %v8277_v16  ;;  %v8526_v46 = vand.u32 4294901760, %v7336_v41  ;;  %v8530_v41 = vand.u32 4294901760, %v7576_v8 }
 0x1bb   : > { %4550 = vmatmul.mubr.f32.vlgmr.msra.gmra.mrb[2].mxu0 %v6547_v30  ;;  %v5396_v1 = vpack.c.bf16 %v8506_v15, %v8505_v31  ;;  %v5399_v57 = vpack.c.bf16 %v8511_v23, %v8510_v3  ;;  %v8517_v31 = vand.u32 4294901760, %v7218_v49  ;;  %v8523_v49 = vand.u32 4294901760, %v7307_v36 }
 0x1bc   : > { %4760 = vmatmul.mubr.f32.vlgmr.msra.gmra.mrb[2].mxu1 %v6547_v30  ;;  %5229 = vmatpush3.bf16.msk.msra.mxu0 %vm7044_vm5, %v8355_v21  ;;  %v5267_v3 = vpack.c.bf16 %v8525_v22, %v8524_v33 }
 0x1bd   : > { %5373 = vmatpush3.bf16.msk.msra.mxu1 %vm7052_vm7, %v8355_v21  ;;  %5230 = vmatprep.subr.bf16.mxu0 %v8277_v16 }
 0x1be   : > { %5374 = vmatprep.subr.bf16.mxu1 %v8277_v16  ;;  %4584 = vmatprep.mubr.msk.f32.mxu0 %vm8303_vm1, %v8270_v13 }
 0x1bf   : > { %4794 = vmatprep.mubr.msk.f32.mxu1 %vm8303_vm1, %v8270_v13 }
 0x1c0   : > { %5232 = vmatpush3.bf16.msk.msra.mxu0 %vm7081_vm6, %v8355_v21 }
 0x1c1   : > { %5376 = vmatpush3.bf16.msk.msra.mxu1 %vm7103_vm11, %v8355_v21  ;;  %5233 = vmatprep.subr.bf16.mxu0 %v8277_v16 }
 0x1c2   : > { %5377 = vmatprep.subr.bf16.mxu1 %v8277_v16 }
 0x1c4   : > { %5235 = vmatpush3.bf16.msk.msra.mxu0 %vm7135_vm9, %v8355_v21 }
 0x1c5   : > { %5379 = vmatpush3.bf16.msk.msra.mxu1 %vm7159_vm0, %v8355_v21  ;;  %5236 = vmatprep.subr.bf16.mxu0 %v8277_v16 }
 0x1c6   : > { %5380 = vmatprep.subr.bf16.mxu1 %v8277_v16 }
 0x1c8   : > { %5238 = vmatpush3.bf16.msk.msra.mxu0 %vm7209_vm14, %v8355_v21 }
 0x1c9   : > { %5382 = vmatpush3.bf16.msk.msra.mxu1 %vm8491_vm13, %v8355_v21  ;;  %5239 = vmatprep.subr.bf16.mxu0 %v8277_v16  ;;  %vm8498_vm13 = vnez %v8497_v35 }
 0x1ca   : > { %5383 = vmatprep.subr.bf16.mxu1 %v8277_v16 }
 0x1cc   : > { %5241 = vmatpush3.bf16.msk.msra.mxu0 %vm7273_vm2, %v8355_v21 }
 0x1cd   : > { %5385 = vmatpush3.bf16.msk.msra.mxu1 %vm8494_vm10, %v8355_v21  ;;  %5242 = vmatprep.subr.bf16.mxu0 %v8277_v16 }
 0x1ce   : > { %5386 = vmatprep.subr.bf16.mxu1 %v8277_v16 }
 0x1d0   : > { %5244 = vmatpush3.bf16.msk.msra.mxu0 %vm8496_vm4, %v8355_v21 }
 0x1d1   : > { %5388 = vmatpush3.bf16.msk.msra.mxu1 %vm8498_vm13, %v8355_v21  ;;  %5245 = vmatprep.subr.bf16.mxu0 %v8277_v16 }
 0x1d2   : > { %5389 = vmatprep.subr.bf16.mxu1 %v8277_v16 }
 0x1d4   : > { %5247 = vmatpush3.bf16.msk.msra.mxu0 %vm7395_vm12, %v8355_v21 }
 0x1d5   : > { %5391 = vmatpush3.bf16.msk.msra.mxu1 %vm7417_vm8, %v8355_v21  ;;  %5248 = vmatprep.subr.bf16.mxu0 %v8277_v16 }
 0x1d6   : > { %5392 = vmatprep.subr.bf16.mxu1 %v8277_v16 }
 0x1d8   : > { %5250 = vmatpush3.bf16.msk.msra.mxu0 %vm7458_vm3, %v8355_v21 }
 0x1d9   : > { %5394 = vmatpush3.bf16.msk.msra.mxu1 %vm7477_vm15, %v8355_v21  ;;  %5251 = vmatprep.subr.bf16.mxu0 %v8277_v16 }
 0x1da   : > { %5395 = vmatprep.subr.bf16.mxu1 %v8277_v16 }
 0x1db   : > { %4585 = vmatmul.mubr.f32.vlgmr.msra.gmra.mrb[2].mxu0 %v8507_v25 }
 0x1dc   : > { %4795 = vmatmul.mubr.f32.vlgmr.msra.gmra.mrb[2].mxu1 %v8507_v25  ;;  %5253 = vmatpush3.bf16.msra.mxu0 %v5252_v45  ;;  %v8515_v25 = vand.u32 4294901760, %v7201_v27  ;;  %v8516_v45 = vand.u32 4294901760, %v7213_v14  ;;  %v8521_v27 = vand.u32 4294901760, %v7277_v7  ;;  %v8522_v14 = vand.u32 4294901760, %v7305_v24 }
 0x1dd   : > { %5397 = vmatpush3.bf16.msra.mxu1 %v5396_v1  ;;  %5254 = vmatprep.subr.bf16.mxu0 %v8277_v16  ;;  %v8527_v7 = vand.u32 4294901760, %v7374_v29  ;;  %v8528_v24 = vand.u32 4294901760, %v7441_v5  ;;  %v5417_v29 = vpack.c.bf16 %v8530_v41, %v8529_v43 }
 0x1de   : > { %5398 = vmatprep.subr.bf16.mxu1 %v8277_v16  ;;  %4619 = vmatprep.mubr.msk.f32.mxu0 %vm8303_vm1, %v8270_v13  ;;  %v5402_v1 = vpack.c.bf16 %v8515_v25, %v8514_v60  ;;  %v5261_v15 = vpack.c.bf16 %v8517_v31, %v8516_v45  ;;  %v5264_v0 = vpack.c.bf16 %v8521_v27, %v8520_v38 }
 0x1df   : > { %4829 = vmatprep.mubr.msk.f32.mxu1 %vm8303_vm1, %v8270_v13  ;;  %v5411_v23 = vpack.c.bf16 %v8527_v7, %v8526_v46  ;;  %v5270_v36 = vpack.c.bf16 %v8528_v24, %v1955_v40 }
 0x1e0   : > { %5256 = vmatpush3.bf16.msra.mxu0 %v5255_v62  ;;  %v5408_v62 = vpack.c.bf16 %v8523_v49, %v8522_v14 }
 0x1e1   : > { %5400 = vmatpush3.bf16.msra.mxu1 %v5399_v57  ;;  %5257 = vmatprep.subr.bf16.mxu0 %v8277_v16 }
 0x1e2   : > { %5401 = vmatprep.subr.bf16.mxu1 %v8277_v16 }
 0x1e4   : > { %5259 = vmatpush3.bf16.msra.mxu0 %v5258_v55 }
 0x1e5   : > { %5403 = vmatpush3.bf16.msra.mxu1 %v5402_v1  ;;  %5260 = vmatprep.subr.bf16.mxu0 %v8277_v16 }
 0x1e6   : > { %5404 = vmatprep.subr.bf16.mxu1 %v8277_v16 }
 0x1e8   : > { %5262 = vmatpush3.bf16.msra.mxu0 %v5261_v15 }
 0x1e9   : > { %5406 = vmatpush3.bf16.msra.mxu1 %v5405_v10  ;;  %5263 = vmatprep.subr.bf16.mxu0 %v8277_v16 }
 0x1ea   : > { %5407 = vmatprep.subr.bf16.mxu1 %v8277_v16 }
 0x1ec   : > { %5265 = vmatpush3.bf16.msra.mxu0 %v5264_v0 }
 0x1ed   : > { %5409 = vmatpush3.bf16.msra.mxu1 %v5408_v62  ;;  %5266 = vmatprep.subr.bf16.mxu0 %v8277_v16 }
 0x1ee   : > { %5410 = vmatprep.subr.bf16.mxu1 %v8277_v16 }
 0x1f0   : > { %5268 = vmatpush3.bf16.msra.mxu0 %v5267_v3 }
 0x1f1   : > { %5412 = vmatpush3.bf16.msra.mxu1 %v5411_v23  ;;  %5269 = vmatprep.subr.bf16.mxu0 %v8277_v16 }
 0x1f2   : > { %5413 = vmatprep.subr.bf16.mxu1 %v8277_v16 }
 0x1f4   : > { %5271 = vmatpush3.bf16.msra.mxu0 %v5270_v36 }
 0x1f5   : > { %5415 = vmatpush3.bf16.msra.mxu1 %v5414_v52  ;;  %5272 = vmatprep.subr.bf16.mxu0 %v8277_v16 }
 0x1f6   : > { %5416 = vmatprep.subr.bf16.mxu1 %v8277_v16 }
 0x1f8   : > { %5274 = vmatpush3.bf16.msra.mxu0 %v5273_v39 }
 0x1f9   : > { %5418 = vmatpush3.bf16.msra.mxu1 %v5417_v29  ;;  %5275 = vmatprep.subr.bf16.mxu0 %v8277_v16 }
 0x1fa   : > { %5419 = vmatprep.subr.bf16.mxu1 %v8277_v16 }
 0x1fb   : > { %4620 = vmatmul.mubr.f32.vlgmr.msra.gmra.mrb[2].mxu0 %v6530_v19 }
 0x1fc   : > { %4830 = vmatmul.mubr.f32.vlgmr.msra.gmra.mrb[2].mxu1 %v6530_v19  ;;  %5277 = vmatpush3.bf16.msk.msra.mxu0 %vm7044_vm5, %v8355_v21  ;;  %vm3141_vm5 = vcmask 261120  }
 0x1fd   : > { %5421 = vmatpush3.bf16.msk.msra.mxu1 %vm7052_vm7, %v8355_v21  ;;  %5278 = vmatprep.subr.bf16.mxu0 %v8277_v16  ;;  %vm3125_vm7 = vcmp.gt.f32.partialorder %v7905_v48, 0.0 }
 0x1fe   : > { %5422 = vmatprep.subr.bf16.mxu1 %v8277_v16  ;;  %4654 = vmatprep.mubr.msk.f32.mxu0 %vm8303_vm1, %v8270_v13 }
 0x1ff   : > { %4864 = vmatprep.mubr.msk.f32.mxu1 %vm8303_vm1, %v8270_v13  ;;  %vm8531_vm1 = vnez %v8490_v28 }
 0x200   : > { %5280 = vmatpush3.bf16.msk.msra.mxu0 %vm7081_vm6, %v8355_v21  ;;  %vm3149_vm6 = vcmask 253952  }
 0x201   : > { %5424 = vmatpush3.bf16.msk.msra.mxu1 %vm7103_vm11, %v8355_v21  ;;  %5281 = vmatprep.subr.bf16.mxu0 %v8277_v16 }
 0x202   : > { %5425 = vmatprep.subr.bf16.mxu1 %v8277_v16 }
 0x204   : > { %5283 = vmatpush3.bf16.msk.msra.mxu0 %vm7135_vm9, %v8355_v21 }
 0x205   : > { %5427 = vmatpush3.bf16.msk.msra.mxu1 %vm7159_vm0, %v8355_v21  ;;  %5284 = vmatprep.subr.bf16.mxu0 %v8277_v16 }
 0x206   : > { %5428 = vmatprep.subr.bf16.mxu1 %v8277_v16 }
 0x208   : > { %5286 = vmatpush3.bf16.msk.msra.mxu0 %vm7209_vm14, %v8355_v21 }
 0x209   : > { %5430 = vmatpush3.bf16.msk.msra.mxu1 %vm8531_vm1, %v8355_v21  ;;  %5287 = vmatprep.subr.bf16.mxu0 %v8277_v16 }
 0x20a   : > { %5431 = vmatprep.subr.bf16.mxu1 %v8277_v16 }
 0x20c   : > { %5289 = vmatpush3.bf16.msk.msra.mxu0 %vm7273_vm2, %v8355_v21 }
 0x20d   : > { %5433 = vmatpush3.bf16.msk.msra.mxu1 %vm8494_vm10, %v8355_v21  ;;  %5290 = vmatprep.subr.bf16.mxu0 %v8277_v16 }
 0x20e   : > { %5434 = vmatprep.subr.bf16.mxu1 %v8277_v16 }
 0x210   : > { %5292 = vmatpush3.bf16.msk.msra.mxu0 %vm8496_vm4, %v8355_v21 }
 0x211   : > { %5436 = vmatpush3.bf16.msk.msra.mxu1 %vm8498_vm13, %v8355_v21  ;;  %5293 = vmatprep.subr.bf16.mxu0 %v8277_v16 }
 0x212   : > { %5437 = vmatprep.subr.bf16.mxu1 %v8277_v16 }
 0x214   : > { %5295 = vmatpush3.bf16.msk.msra.mxu0 %vm7395_vm12, %v8355_v21 }
 0x215   : > { %5439 = vmatpush3.bf16.msk.msra.mxu1 %vm7417_vm8, %v8355_v21  ;;  %5296 = vmatprep.subr.bf16.mxu0 %v8277_v16 }
 0x216   : > { %5440 = vmatprep.subr.bf16.mxu1 %v8277_v16 }
 0x218   : > { %5298 = vmatpush3.bf16.msk.msra.mxu0 %vm7458_vm3, %v8355_v21 }
 0x219   : > { %5442 = vmatpush3.bf16.msk.msra.mxu1 %vm7477_vm15, %v8355_v21 }
 0x21b   : > { %4655 = vmatmul.mubr.f32.vlgmr.msra.gmra.mrb[2].mxu0 %v6530_v19 }
 0x21c   : > { %4865 = vmatmul.mubr.f32.vlgmr.msra.gmra.mrb[2].mxu1 %v6530_v19  ;;  %v7911_v19 = vsel %vm3125_vm7, 1.0, %v8270_v13 }
 0x21d   : > { %v3151_v21 = vsel %vm3141_vm5, %v7911_v19, 0.0 }
 0x21e   : > { %v3152_v11 = vrot.slane %v3151_v21, 4 }
 0x220   : > { %v3153_v51 = vadd.f32 %v3152_v11, %v3151_v21 }
 0x222   : > { %v3154_v12 = vrot.slane %v3153_v51, 2 }
 0x224   : > { %v3155_v40 = vadd.f32 %v3154_v12, %v3153_v51 }
 0x226   : > { %v3156_v9 = vrot.slane %v3155_v40, 1 }
 0x228   : > { %v3157_v8 = vadd.f32 %v3156_v9, %v3155_v40 }
 0x22a   : > { %3158 = vst.msk [vmem:[%s320_s14] sm:$0x1] %vm3149_vm6, %v3157_v8 }
 0x22e   : > { %v7899_v44 = vpop.f32.mrb[0].mxu0 }
 0x22f   : > { %v7901_v6 = vpop.f32.mrb[0].mxu1  ;;  %v4236_v5 = vpop.f32.mrb[1].mxu0 }
 0x230   : > { %v4446_v16 = vpop.f32.mrb[1].mxu1 }
 0x231   : > { %5673 = shalt.err (!%p5670_p13)
}
 0x232   : > { %s5674_s13 = scalar_lea.hbm %s7923_s6, 16  ;;  %s5678_s29 = scalar_lea.hbm %s8017_s4, 32 }
 0x233   : > { %p5675_p7 = scmp.ne.s32.totalorder %s7923_s6, %s5674_s13  ;;  %p5679_p5 = scmp.lt.u32.totalorder %s7923_s6, %s8017_s4 }
 0x234   : > { %p5680_p1 = scmp.lt.u32.totalorder %s5678_s29, %s5674_s13  ;;  %p5682_p2 = scmp.lt.u32.totalorder %s5674_s13, %s7923_s6 }
 0x235   : > { %p5676_p11 = pnand %p5675_p7, %p8532_p6 }
 0x236   : > { %p5681_p0 = por %p5680_p1, %p5679_p5 }
 0x237   : > { %p5677_p3 = pneg %p5676_p11 }
 0x238   : > { %p5683_p12 = por %p5682_p2, %p5681_p0 }
 0x23a   : > { %p5684_p4 = pnand %p5683_p12, %p5677_p3 }
 0x23c   : > { %5687 = shalt.err (!%p5684_p4)
}
 0x23d   : > { %5490 = dma.vmem_to_hbm [thread:$0]  (%p8532_p6), %s3192_s7, 16, %s7923_s6, %s3164_s1   ;;  %v326_v13 = vld [vmem:[%s6006_s10 + $0x18] sm:$0xff]  ;;  %v323_v54 = vld [vmem:[%s6006_s10] sm:$0xff]  ;;  %v324_v32 = vld [vmem:[%s6006_s10 + $0x8] sm:$0xff] }
 0x23e   : > { %v325_v26 = vld [vmem:[%s6006_s10 + $0x10] sm:$0xff]  ;;  %v3112_v30 = vadd.f32 %v326_v13, %v324_v32  ;;  %v3114_v2 = vmin.f32 %v323_v54, %v7899_v44  ;;  %v3118_v56 = vmin.f32 %v324_v32, %v7901_v6  ;;  %s314_s10 = scalar_lea.vmem [#allocation8], %s6002_s0  ;;  %s7963_s14 = scalar_lea.hbm %s8016_s3, %s3614_s27 }
 0x23f   : > { %v3111_v58 = vadd.f32 %v325_v26, %v323_v54  ;;  %s3177_s26 = sshll.u32 %s314_s10, 4  ;;  %s3160_s9 = scalar_lea.sflag [#allocation4], %s6002_s0  ;;  %s7965_s26 = int_to_ptr.vmem [resolvable:$true] %s3177_s26 }
 0x240   : > { %s5688_s22 = scalar_lea.vmem %s7965_s26, 16  ;;  %s5790_s6 = smov [#allocation8]  }
 0x241   : > { %v3113_v28 = vmul.f32 %v3112_v30, %v3111_v58  ;;  %p5689_p8 = scmp.ne.s32.totalorder %s7965_s26, %s5688_s22  ;;  %s5692_s18 = sshll.u32 %s5790_s6, 4  ;;  %s5693_s18 = int_to_ptr.vmem [resolvable:$false] %s5692_s18 }
 0x242   : > { %s5694_s7 = scalar_lea.vmem %s5693_s18, 32  ;;  %p5695_p13 = scmp.lt.s32.totalorder %s7965_s26, %s5693_s18 }
 0x243   : > { %p5690_p9 = pnand %p5689_p8, %p8532_p6  ;;  %p5696_p7 = scmp.lt.s32.totalorder %s5694_s7, %s5688_s22 }
 0x245   : > { %p5691_p10 = pneg %p5690_p9  ;;  %p5697_p11 = por %p5696_p7, %p5695_p13 }
 0x247   : > { %p5698_p3 = pnand %p5697_p11, %p5691_p10 }
 0x2ee   : > { %v2414_v17 = vpop.f32.mrb[2].mxu0 }
 0x2ef   : > { %v3104_v4 = vpop.f32.mrb[2].mxu1  ;;  %v3108_v20 = vadd.f32 %v2414_v17, %v7899_v44  ;;  %v3115_v50 = vmin.f32 %v325_v26, %v2414_v17  ;;  %v4656_v18 = vpop.f32.mrb[3].mxu0 }
 0x2f0   : > { %v3109_v35 = vadd.f32 %v3104_v4, %v7901_v6  ;;  %v3117_v34 = vmin.f32 %v326_v13, %v3104_v4  ;;  %v4866_v42 = vpop.f32.mrb[3].mxu1 }
 0x2f1   : > { %v3116_v63 = vadd.f32 %v3115_v50, %v3114_v2 }
 0x2f2   : > { %v3110_v61 = vmul.f32 %v3109_v35, %v3108_v20  ;;  %v3119_v57 = vadd.f32 %v3118_v56, %v3117_v34 }
 0x2f4   : > { %v3120_v53 = vmul.f32 %v3119_v57, %v3116_v63  ;;  %v3121_v47 = vadd.f32 %v3113_v28, %v3110_v61 }
 0x2f6   : > { %v3122_v55 = vsub.f32 %v3121_v47, %v3120_v53  ;;  %v3129_v60 = vadd.f32 1.0, %v3120_v53 }
 0x2f8   : > { %v3130_v25 = vsel %vm3125_vm7, %v3129_v60, 1.0  ;;  %v3131_v1 = vadd.f32 1.0, %v3122_v55 }
 0x2f9   : > { %5566 = vlog2.f32 %v3130_v25 }
 0x2fa   : > { %v3132_v45 = vsel %vm3125_vm7, %v3131_v1, 1.0 }
 0x2fb   : > { %5568 = vlog2.f32 %v3132_v45 }
 0x303   : > { %v5567_v31 = vpop.eup %5566 }
 0x304   : > { %v3136_v37 = vmul.f32 0.6931472, %v5567_v31 }
 0x305   : > { %v5569_v15 = vpop.eup %5568 }
 0x306   : > { %v3134_v59 = vmul.f32 0.6931472, %v5569_v15 }
 0x308   : > { %v3137_v10 = vsub.f32 %v3134_v59, %v3136_v37 }
 0x30a   : > { %v3140_v38 = vmul.f32 %v7911_v19, %v3137_v10 }
 0x30c   : > { %v3142_v27 = vsel %vm3141_vm5, %v3140_v38, 0.0 }
 0x30d   : > { %v3143_v0 = vrot.slane %v3142_v27, 4 }
 0x30f   : > { %v3144_v14 = vadd.f32 %v3143_v0, %v3142_v27 }
 0x311   : > { %v3145_v49 = vrot.slane %v3144_v14, 2 }
 0x313   : > { %v3146_v62 = vadd.f32 %v3145_v49, %v3144_v14 }
 0x315   : > { %v3147_v33 = vrot.slane %v3146_v62, 1 }
 0x317   : > { %v3148_v22 = vadd.f32 %v3147_v33, %v3146_v62 }
 0x319   : > { %3150 = vst.msk [vmem:[%s314_s10] sm:$0x1] %vm3149_vm6, %v3148_v22 }
 0x31a   : > { %5701 = shalt.err (!%p5698_p3)
}
 0x31b   : > { %s5702_s0 = scalar_lea.hbm %s7963_s14, 16  ;;  %s5706_s19 = scalar_lea.hbm %s8016_s3, 32 }
 0x31c   : > { %p5703_p5 = scmp.ne.s32.totalorder %s7963_s14, %s5702_s0  ;;  %p5707_p2 = scmp.lt.u32.totalorder %s7963_s14, %s8016_s3 }
 0x31d   : > { %p5708_p12 = scmp.lt.u32.totalorder %s5706_s19, %s5702_s0  ;;  %p5710_p8 = scmp.lt.u32.totalorder %s5702_s0, %s7963_s14 }
 0x31e   : > { %p5704_p1 = pnand %p5703_p5, %p8532_p6 }
 0x31f   : > { %p5709_p4 = por %p5708_p12, %p5707_p2 }
 0x320   : > { %p5705_p0 = pneg %p5704_p1 }
 0x321   : > { %p5711_p9 = por %p5710_p8, %p5709_p4 }
 0x323   : > { %p5712_p10 = pnand %p5711_p9, %p5705_p0 }
 0x325   : > { %5715 = shalt.err (!%p5712_p10)
}
 0x326   : > { %5489 = dma.vmem_to_hbm [thread:$0]  (%p8532_p6), %s7965_s26, 16, %s7963_s14, %s3160_s9  }
 0x327 PF: > { %s3203_s24 = sand.u32 1, %s5758_s15   ;;  %p8533_p13 = scmp.ne.s32.totalorder %s8187_s30, 0 }
 0x328   : > { %p8534_p7 = scmp.ge.s32.totalorder %s5778_s20, 2  ;;  %s3204_s13 = scalar_lea.sflag [#allocation4], %s3203_s24 }
 0x32a   : > { %p5504_p11 = pnand %p8534_p7, %p8533_p13 }
 0x32c   : > { %5749 = dma.done.wait (!%p5504_p11), %s3204_s13, 16  }
 0x32d   : > { %5751 = vsyncadd (!%p5504_p11), %s3204_s13, 4294967280  ;;  %s3212_s12 = scalar_lea.sflag [#allocation10], %s3203_s24 }
 0x32e   : > { %5753 = dma.done.wait (!%p5504_p11), %s3212_s12, 16  }
 0x32f   : > { %5755 = vsyncadd (!%p5504_p11), %s3212_s12, 4294967280  ;;  %s27_s20 = sadd.s32 1, %s5778_s20   ;;  %s8535_s28 = sld [smem:[#allocation15_spill]] }
 0x330   : > { %p24_p3 = scmp.ge.s32.totalorder %s27_s20, 4   ;;  %s8536_s17 = sld [smem:[#allocation18_spill]] }
 0x331   : > { %s8537_s18 = sld [smem:[#allocation16_spill]]  ;;  %s8538_s19 = sld [smem:[#allocation17_spill]] }
 0x332   : > { %s8539_s15 = smov %s5762_s16  ;;  %26 = sbr.rel (!%p24_p3) target bundleno = 13 (0xd), region = 118 }
 0x335   : > { %s8540_s16 = smov %s8535_s28 }
 0x339   :  { %3216 = vsyncpa [#allocation3], 1 }
 0x33a   :  { %3218 = vsyncpa [#allocation3 + $0x1], 1 }
 0x33b   :  { %3219 = vsyncpa [#allocation6], 1 }
 0x33c   :  { %3221 = vsyncpa [#allocation6 + $0x1], 1 }
 0x33d   :  { %3222 = vsyncpa [#allocation4], 1 }
 0x33e   :  { %3224 = vsyncpa [#allocation4 + $0x1], 1 }
 0x33f   :  { %3225 = vsyncpa [#allocation10], 1 }
 0x340   :  { %3227 = vsyncpa [#allocation10 + $0x1], 1 }

</bundles_post_ra>
